<compile_context>
chip_gen: v5e
topology: v5e:2x2
jax: 0.10.0
libtpu: 0.0.40
codegen_flags: <defaults>
</compile_context>

<pallas_src>
import jax
import jax.numpy as jnp
from jax.experimental import pallas as pl
from jax.experimental.pallas import tpu as pltpu


# ---------------------------------------------------------------------------
# Pallas kernel: hoisted input projection + LSTM recurrence + masked freeze
#                + output linear  (one batch sub-tile per grid step)
# ---------------------------------------------------------------------------
def lstm_disc_kernel(x_ref, mask_ref, w_ih_ref, w_hh_ref, b_ref,
                     w_out_ref, b_out_ref, out_ref, zx_scr):
    # x_ref:     (T, BT, E)   bf16 time-major embedded trace (this batch tile)
    # mask_ref:  (T, BT, 1)   f32, 1.0 = valid step, 0.0 = pad
    # w_ih_ref:  (E, 4H)      bf16 input->gates weights (g-gate cols pre-scaled x2)
    # w_hh_ref:  (H, 4H)      bf16 hidden->gates weights (g-gate cols pre-scaled x2)
    # b_ref:     (1, 4H)      f32 b_ih + b_hh (g-gate cols pre-scaled x2)
    # w_out_ref: (H, 128)     bf16 output linear weights (lane-padded)
    # b_out_ref: (1, 128)     f32
    # out_ref:   (BT, 128)    f32 lane-dense logits slab (first 2 lanes are real)
    # zx_scr:    (T*BT, 4H)   f32 VMEM scratch holding the hoisted input projection
    T, BT, E = x_ref.shape
    H = w_hh_ref.shape[0]

    # One big bf16 MXU pass: input projection + bias for every timestep at once.
    # Removes T tiny matmuls + bias adds from the serial recurrence.
    x2 = x_ref[...].reshape(T * BT, E)                        # layout-preserving merge
    zx_scr[...] = (jnp.dot(x2, w_ih_ref[...],
                           preferred_element_type=jnp.float32)
                   + b_ref[...])                              # (T*BT, 4H) f32

    def step(t, carry):
        h, c = carry                                          # (BT, H) f32, in vregs
        row = pl.multiple_of(t * BT, BT)
        # Per-step critical path: one bf16 (BT,H)x(H,4H) MXU push + one sigmoid pass.
        z = zx_scr[pl.ds(row, BT), :] + jnp.dot(
            h.astype(jnp.bfloat16), w_hh_ref[...],
            preferred_element_type=jnp.float32)               # (BT, 4H) f32

        s = jax.nn.sigmoid(z)                                 # single EUP pass over (BT, 4H)
        i = s[:, 0 * H:1 * H]
        f = s[:, 1 * H:2 * H]
        g = 2.0 * s[:, 2 * H:3 * H] - 1.0                     # tanh(pre): g cols were pre-scaled x2
        o = s[:, 3 * H:4 * H]

        c_new = f * c + i * g
        h_new = o * jnp.tanh(c_new)                           # (BT, H) EUP pass

        # mask-freeze (select): padded steps keep old state, so at the end h holds
        # the hidden of the last *valid* step (== packed-sequence gather).
        m = mask_ref[t] > 0.0                                 # (BT, 1) bool
        h = jnp.where(m, h_new, h)
        c = jnp.where(m, c_new, c)
        return (h, c)

    h0 = jnp.zeros((BT, H), jnp.float32)
    c0 = jnp.zeros((BT, H), jnp.float32)
    h, _ = jax.lax.fori_loop(0, T, step, (h0, c0), unroll=min(T, 8))

    # Lane-dense output store; wrapper slices back to (B, 2).
    out_ref[...] = (jnp.dot(h.astype(jnp.bfloat16), w_out_ref[...],
                            preferred_element_type=jnp.float32)
                    + b_out_ref[...])                         # (BT, 128)


# ---------------------------------------------------------------------------
# Wrapper (glue in plain JAX): embedding gather + layout / weight prep
# ---------------------------------------------------------------------------
def discriminator_forward(trace_loc, trace_time, trace_mask, params, *, batch_tile=None):
    del trace_time  # unused by the PyTorch forward as well
    emb = params["road_emb"][trace_loc]                        # (B, T, E)
    B, T = trace_loc.shape
    E = emb.shape[-1]
    H = params["w_hh"].shape[1]

    # Batch tile: fill the MXU M dimension (up to 256 rows / grid step); shard the
    # remaining batch over a "parallel" grid axis (2 TensorCores on v7x).
    if batch_tile is None:
        batch_tile = min(B, 256)
    BT = batch_tile
    assert B % BT == 0 and BT % 8 == 0, "batch tile must divide B and be a multiple of 8"
    n_bt = B // BT

    # Time-major activations in bf16 (halved HBM->VMEM traffic, bf16 MXU operands).
    x = jnp.transpose(emb, (1, 0, 2)).astype(jnp.bfloat16)     # (T, B, E)
    # Mask only as (T, B, 1); the H-broadcast happens in the per-step select.
    mask = jnp.transpose(trace_mask.astype(jnp.float32), (1, 0))[:, :, None]  # (T, B, 1)

    # Pre-scale the g-gate columns (2H:3H) by 2 so the kernel can recover
    # tanh(pre) = 2*sigmoid(2*pre) - 1 from its single sigmoid pass.
    gscale = jnp.ones((4 * H,), jnp.float32).at[2 * H:3 * H].set(2.0)
    w_ih_t = (params["w_ih"].T * gscale[None, :]).astype(jnp.bfloat16)  # (E, 4H)
    w_hh_t = (params["w_hh"].T * gscale[None, :]).astype(jnp.bfloat16)  # (H, 4H)
    bias = ((params["b_ih"] + params["b_hh"]) * gscale)[None, :]        # (1, 4H) f32

    # Pad the output head to a lane-dense 128-wide slab (unmasked vst).
    OUT_PAD = 128
    w_out_t = (jnp.zeros((H, OUT_PAD), jnp.float32)
               .at[:, :2].set(params["w_out"].T)).astype(jnp.bfloat16)
    b_out = jnp.zeros((1, OUT_PAD), jnp.float32).at[:, :2].set(params["b_out"])

    grid_spec = pltpu.PrefetchScalarGridSpec(
        num_scalar_prefetch=0,
        grid=(n_bt,),
        in_specs=[
            pl.BlockSpec((T, BT, E), lambda b: (0, b, 0)),       # x (batch-tiled)
            pl.BlockSpec((T, BT, 1), lambda b: (0, b, 0)),       # mask (batch-tiled)
            pl.BlockSpec((E, 4 * H), lambda b: (0, 0)),          # W_ih (resident)
            pl.BlockSpec((H, 4 * H), lambda b: (0, 0)),          # W_hh (resident)
            pl.BlockSpec((1, 4 * H), lambda b: (0, 0)),          # bias
            pl.BlockSpec((H, OUT_PAD), lambda b: (0, 0)),        # W_out
            pl.BlockSpec((1, OUT_PAD), lambda b: (0, 0)),        # b_out
        ],
        out_specs=pl.BlockSpec((BT, OUT_PAD), lambda b: (b, 0)),
        scratch_shapes=[pltpu.VMEM((T * BT, 4 * H), jnp.float32)],  # hoisted x @ W_ih + b
    )

    out = pl.pallas_call(
        lstm_disc_kernel,
        out_shape=jax.ShapeDtypeStruct((B, OUT_PAD), jnp.float32),
        grid_spec=grid_spec,
        compiler_params=pltpu.CompilerParams(
            dimension_semantics=("parallel",),      # shard batch tiles across TCs (v7x)
            vmem_limit_bytes=32 * 1024 * 1024,
        ),
    )(x, mask, w_ih_t, w_hh_t, bias, w_out_t, b_out)
    return out[:, :2]                                          # (B, 2) logits


# ---------------------------------------------------------------------------
# Pure-JAX reference (mirrors PyTorch semantics, full f32) for a sanity check
# ---------------------------------------------------------------------------
def reference_forward(trace_loc, trace_mask, params):
    emb = params["road_emb"][trace_loc].astype(jnp.float32)    # (B, T, E)
    B, T, E = emb.shape
    H = params["w_hh"].shape[1]
    h = jnp.zeros((B, H), jnp.float32)
    c = jnp.zeros((B, H), jnp.float32)
    bias = params["b_ih"] + params["b_hh"]
    for t in range(T):
        x_t = emb[:, t, :]
        m = trace_mask[:, t].astype(jnp.float32)[:, None]
        z = x_t @ params["w_ih"].T + h @ params["w_hh"].T + bias
        i = jax.nn.sigmoid(z[:, :H])
        f = jax.nn.sigmoid(z[:, H:2 * H])
        g = jnp.tanh(z[:, 2 * H:3 * H])
        o = jax.nn.sigmoid(z[:, 3 * H:4 * H])
        c_new = f * c + i * g
        h_new = o * jnp.tanh(c_new)
        h = m * h_new + (1.0 - m) * h
        c = m * c_new + (1.0 - m) * c
    return h @ params["w_out"].T + params["b_out"]


# ---------------------------------------------------------------------------
# Deterministic parameter init + demo
# ---------------------------------------------------------------------------
def init_params(key, road_num, road_pad, emb_size, hidden_size):
    ks = jax.random.split(key, 7)
    scale = 0.1
    road_emb = scale * jax.random.normal(ks[0], (road_num, emb_size), jnp.float32)
    road_emb = road_emb.at[road_pad].set(0.0)                  # padding_idx row = 0
    return {
        "road_emb": road_emb,
        "w_ih": scale * jax.random.normal(ks[1], (4 * hidden_size, emb_size), jnp.float32),
        "w_hh": scale * jax.random.normal(ks[2], (4 * hidden_size, hidden_size), jnp.float32),
        "b_ih": scale * jax.random.normal(ks[3], (4 * hidden_size,), jnp.float32),
        "b_hh": scale * jax.random.normal(ks[4], (4 * hidden_size,), jnp.float32),
        "w_out": scale * jax.random.normal(ks[5], (2, hidden_size), jnp.float32),
        "b_out": scale * jax.random.normal(ks[6], (2,), jnp.float32),
    }


if __name__ == "__main__":
    # config / data_feature (synthetic, small)
    B, T = 32, 8
    road_num, road_pad = 40, 0
    road_emb_size, hidden_size = 16, 32          # lstm_layer_num = 1

    key = jax.random.PRNGKey(0)
    kp, kloc, ktime, klen = jax.random.split(key, 4)
    params = init_params(kp, road_num, road_pad, road_emb_size, hidden_size)

    # trace lengths and padded sequences
    lengths = jax.random.randint(klen, (B,), 1, T + 1, dtype=jnp.int32)
    pos = jnp.arange(T)[None, :]
    trace_mask = (pos < lengths[:, None]).astype(jnp.int32)    # (B, T)
    trace_loc = jax.random.randint(kloc, (B, T), 1, road_num, dtype=jnp.int32)
    trace_loc = jnp.where(trace_mask == 1, trace_loc, road_pad)
    trace_time = jax.random.randint(ktime, (B, T), 0, 1440, dtype=jnp.int32)  # unused

    # batch_tile=16 exercises the parallel grid axis (grid=(2,)); each tile fills
    # the MXU M dimension with 16 rows (up to 256 at production batch sizes).
    logits = discriminator_forward(trace_loc, trace_time, trace_mask, params, batch_tile=16)
    logits = jax.block_until_ready(logits)

    ref = reference_forward(trace_loc, trace_mask, params)
    assert logits.shape == (B, 2)
    # bf16 MXU operands perturb the result slightly vs. the pure-f32 reference.
    assert jnp.allclose(logits, ref, rtol=1e-2, atol=1e-2), (logits, ref)

    print("KERNEL_OK")
</pallas_src>

<mosaic_0001>
module attributes {stable_mosaic.version = 11 : i64} {
  func.func @lstm_disc_kernel(%arg0: i32, %arg1: memref<8x16x16xbf16, #tpu.memory_space<vmem>>, %arg2: memref<8x16x1xf32, #tpu.memory_space<vmem>>, %arg3: memref<16x128xbf16, #tpu.memory_space<vmem>>, %arg4: memref<32x128xbf16, #tpu.memory_space<vmem>>, %arg5: memref<1x128xf32, #tpu.memory_space<vmem>>, %arg6: memref<32x128xbf16, #tpu.memory_space<vmem>>, %arg7: memref<1x128xf32, #tpu.memory_space<vmem>>, %arg8: memref<16x128xf32, #tpu.memory_space<vmem>>, %arg9: memref<128x128xf32, #tpu.memory_space<vmem>>) attributes {dimension_semantics = [#tpu.dimension_semantics<parallel>], iteration_bounds = array<i64: 2>, scalar_prefetch = 0 : i64, scratch_operands = 1 : i64, tpu.core_type = #tpu.core_type<tc>, window_params = [{transform_indices = @transform_0, window_bounds = array<i64: 8, 16, 16>}, {transform_indices = @transform_1, window_bounds = array<i64: 8, 16, 1>}, {pipeline_mode = #tpu.pipeline_mode<synchronous>, transform_indices = @transform_2, window_bounds = array<i64: 16, 128>}, {pipeline_mode = #tpu.pipeline_mode<synchronous>, transform_indices = @transform_3, window_bounds = array<i64: 32, 128>}, {pipeline_mode = #tpu.pipeline_mode<synchronous>, transform_indices = @transform_4, window_bounds = array<i64: 1, 128>}, {pipeline_mode = #tpu.pipeline_mode<synchronous>, transform_indices = @transform_5, window_bounds = array<i64: 32, 128>}, {pipeline_mode = #tpu.pipeline_mode<synchronous>, transform_indices = @transform_6, window_bounds = array<i64: 1, 128>}, {transform_indices = @transform_7, window_bounds = array<i64: 16, 128>}]} {
    %c0 = arith.constant 0 : index
    %c0_0 = arith.constant 0 : index
    %c0_1 = arith.constant 0 : index
    %0 = vector.load %arg1[%c0, %c0_0, %c0_1] : memref<8x16x16xbf16, #tpu.memory_space<vmem>>, vector<8x16x16xbf16>
    %1 = vector.shape_cast %0 : vector<8x16x16xbf16> to vector<128x16xbf16>
    %c0_2 = arith.constant 0 : index
    %c0_3 = arith.constant 0 : index
    %2 = vector.load %arg3[%c0_2, %c0_3] : memref<16x128xbf16, #tpu.memory_space<vmem>>, vector<16x128xbf16>
    %cst = arith.constant dense<0.000000e+00> : vector<128x128xf32>
    %3 = tpu.matmul %1, %2, %cst {dimension_numbers = #tpu.dot_dimension_numbers<[1], [0], [0], [1], [0, 0, 1, 1], [], []>} : vector<128x16xbf16>, vector<16x128xbf16>, vector<128x128xf32> -> vector<128x128xf32>
    %c0_4 = arith.constant 0 : index
    %c0_5 = arith.constant 0 : index
    %4 = vector.load %arg5[%c0_4, %c0_5] : memref<1x128xf32, #tpu.memory_space<vmem>>, vector<1x128xf32>
    %5 = vector.broadcast %4 : vector<1x128xf32> to vector<128x128xf32>
    %6 = arith.addf %3, %5 : vector<128x128xf32>
    %c0_6 = arith.constant 0 : index
    %c0_7 = arith.constant 0 : index
    %7 = vector.load %arg9[%c0_6, %c0_7] : memref<128x128xf32, #tpu.memory_space<vmem>>, vector<128x128xf32>
    tpu.vector_store %arg9[%c0_6, %c0_7], %6 {strides = array<i32>} : memref<128x128xf32, #tpu.memory_space<vmem>>, vector<128x128xf32>,
    %cst_8 = arith.constant 0.000000e+00 : f32
    %8 = vector.broadcast %cst_8 : f32 to vector<16x32xf32>
    %cst_9 = arith.constant 0.000000e+00 : f32
    %9 = vector.broadcast %cst_9 : f32 to vector<16x32xf32>
    %c0_i32 = arith.constant 0 : i32
    %c16_i32 = arith.constant 16 : i32
    %10 = arith.muli %c0_i32, %c16_i32 : i32
    %11 = tpu.assume_multiple %10, 16 : i32
    %12 = arith.index_cast %11 : i32 to index
    %c0_10 = arith.constant 0 : index
    %13 = vector.load %arg9[%12, %c0_10] : memref<128x128xf32, #tpu.memory_space<vmem>>, vector<16x128xf32>
    %14 = arith.truncf %8 : vector<16x32xf32> to vector<16x32xbf16>
    %c0_11 = arith.constant 0 : index
    %c0_12 = arith.constant 0 : index
    %15 = vector.load %arg4[%c0_11, %c0_12] : memref<32x128xbf16, #tpu.memory_space<vmem>>, vector<32x128xbf16>
    %cst_13 = arith.constant dense<0.000000e+00> : vector<16x128xf32>
    %16 = tpu.matmul %14, %15, %cst_13 {dimension_numbers = #tpu.dot_dimension_numbers<[1], [0], [0], [1], [0, 0, 1, 1], [], []>} : vector<16x32xbf16>, vector<32x128xbf16>, vector<16x128xf32> -> vector<16x128xf32>
    %17 = arith.addf %13, %16 : vector<16x128xf32>
    %18 = arith.negf %17 : vector<16x128xf32>
    %19 = math.exp %18 : vector<16x128xf32>
    %cst_14 = arith.constant 1.000000e+00 : f32
    %20 = vector.broadcast %cst_14 : f32 to vector<16x128xf32>
    %21 = arith.addf %20, %19 : vector<16x128xf32>
    %22 = arith.divf %20, %21 : vector<16x128xf32>
    %23 = vector.extract_strided_slice %22 {offsets = [0, 0], sizes = [16, 32], strides = [1, 1]} : vector<16x128xf32> to vector<16x32xf32>
    %24 = vector.extract_strided_slice %22 {offsets = [0, 32], sizes = [16, 32], strides = [1, 1]} : vector<16x128xf32> to vector<16x32xf32>
    %25 = vector.extract_strided_slice %22 {offsets = [0, 64], sizes = [16, 32], strides = [1, 1]} : vector<16x128xf32> to vector<16x32xf32>
    %cst_15 = arith.constant 2.000000e+00 : f32
    %26 = vector.broadcast %cst_15 : f32 to vector<16x32xf32>
    %27 = arith.mulf %26, %25 : vector<16x32xf32>
    %cst_16 = arith.constant 1.000000e+00 : f32
    %28 = vector.broadcast %cst_16 : f32 to vector<16x32xf32>
    %29 = arith.subf %27, %28 : vector<16x32xf32>
    %30 = vector.extract_strided_slice %22 {offsets = [0, 96], sizes = [16, 32], strides = [1, 1]} : vector<16x128xf32> to vector<16x32xf32>
    %31 = arith.mulf %24, %9 : vector<16x32xf32>
    %32 = arith.mulf %23, %29 : vector<16x32xf32>
    %33 = arith.addf %31, %32 : vector<16x32xf32>
    %34 = math.tanh %33 : vector<16x32xf32>
    %35 = arith.mulf %30, %34 : vector<16x32xf32>
    %36 = arith.index_cast %c0_i32 : i32 to index
    %c0_17 = arith.constant 0 : index
    %c0_18 = arith.constant 0 : index
    %37 = vector.load %arg2[%36, %c0_17, %c0_18] : memref<8x16x1xf32, #tpu.memory_space<vmem>>, vector<1x16x1xf32>
    %38 = vector.shape_cast %37 : vector<1x16x1xf32> to vector<16x1xf32>
    %cst_19 = arith.constant 0.000000e+00 : f32
    %39 = vector.broadcast %cst_19 : f32 to vector<16x1xf32>
    %40 = arith.cmpf ogt, %38, %39 : vector<16x1xf32>
    %41 = vector.shape_cast %40 : vector<16x1xi1> to vector<16x1xi1>
    %42 = vector.broadcast %41 : vector<16x1xi1> to vector<16x32xi1>
    %43 = arith.select %42, %35, %8 : vector<16x32xi1>, vector<16x32xf32>
    %44 = vector.shape_cast %40 : vector<16x1xi1> to vector<16x1xi1>
    %45 = vector.broadcast %44 : vector<16x1xi1> to vector<16x32xi1>
    %46 = arith.select %45, %33, %9 : vector<16x32xi1>, vector<16x32xf32>
    %c1_i32 = arith.constant 1 : i32
    %c16_i32_20 = arith.constant 16 : i32
    %47 = arith.muli %c1_i32, %c16_i32_20 : i32
    %48 = tpu.assume_multiple %47, 16 : i32
    %49 = arith.index_cast %48 : i32 to index
    %c0_21 = arith.constant 0 : index
    %50 = vector.load %arg9[%49, %c0_21] : memref<128x128xf32, #tpu.memory_space<vmem>>, vector<16x128xf32>
    %51 = arith.truncf %43 : vector<16x32xf32> to vector<16x32xbf16>
    %c0_22 = arith.constant 0 : index
    %c0_23 = arith.constant 0 : index
    %52 = vector.load %arg4[%c0_22, %c0_23] : memref<32x128xbf16, #tpu.memory_space<vmem>>, vector<32x128xbf16>
    %cst_24 = arith.constant dense<0.000000e+00> : vector<16x128xf32>
    %53 = tpu.matmul %51, %52, %cst_24 {dimension_numbers = #tpu.dot_dimension_numbers<[1], [0], [0], [1], [0, 0, 1, 1], [], []>} : vector<16x32xbf16>, vector<32x128xbf16>, vector<16x128xf32> -> vector<16x128xf32>
    %54 = arith.addf %50, %53 : vector<16x128xf32>
    %55 = arith.negf %54 : vector<16x128xf32>
    %56 = math.exp %55 : vector<16x128xf32>
    %cst_25 = arith.constant 1.000000e+00 : f32
    %57 = vector.broadcast %cst_25 : f32 to vector<16x128xf32>
    %58 = arith.addf %57, %56 : vector<16x128xf32>
    %59 = arith.divf %57, %58 : vector<16x128xf32>
    %60 = vector.extract_strided_slice %59 {offsets = [0, 0], sizes = [16, 32], strides = [1, 1]} : vector<16x128xf32> to vector<16x32xf32>
    %61 = vector.extract_strided_slice %59 {offsets = [0, 32], sizes = [16, 32], strides = [1, 1]} : vector<16x128xf32> to vector<16x32xf32>
    %62 = vector.extract_strided_slice %59 {offsets = [0, 64], sizes = [16, 32], strides = [1, 1]} : vector<16x128xf32> to vector<16x32xf32>
    %cst_26 = arith.constant 2.000000e+00 : f32
    %63 = vector.broadcast %cst_26 : f32 to vector<16x32xf32>
    %64 = arith.mulf %63, %62 : vector<16x32xf32>
    %cst_27 = arith.constant 1.000000e+00 : f32
    %65 = vector.broadcast %cst_27 : f32 to vector<16x32xf32>
    %66 = arith.subf %64, %65 : vector<16x32xf32>
    %67 = vector.extract_strided_slice %59 {offsets = [0, 96], sizes = [16, 32], strides = [1, 1]} : vector<16x128xf32> to vector<16x32xf32>
    %68 = arith.mulf %61, %46 : vector<16x32xf32>
    %69 = arith.mulf %60, %66 : vector<16x32xf32>
    %70 = arith.addf %68, %69 : vector<16x32xf32>
    %71 = math.tanh %70 : vector<16x32xf32>
    %72 = arith.mulf %67, %71 : vector<16x32xf32>
    %73 = arith.index_cast %c1_i32 : i32 to index
    %c0_28 = arith.constant 0 : index
    %c0_29 = arith.constant 0 : index
    %74 = vector.load %arg2[%73, %c0_28, %c0_29] : memref<8x16x1xf32, #tpu.memory_space<vmem>>, vector<1x16x1xf32>
    %75 = vector.shape_cast %74 : vector<1x16x1xf32> to vector<16x1xf32>
    %cst_30 = arith.constant 0.000000e+00 : f32
    %76 = vector.broadcast %cst_30 : f32 to vector<16x1xf32>
    %77 = arith.cmpf ogt, %75, %76 : vector<16x1xf32>
    %78 = vector.shape_cast %77 : vector<16x1xi1> to vector<16x1xi1>
    %79 = vector.broadcast %78 : vector<16x1xi1> to vector<16x32xi1>
    %80 = arith.select %79, %72, %43 : vector<16x32xi1>, vector<16x32xf32>
    %81 = vector.shape_cast %77 : vector<16x1xi1> to vector<16x1xi1>
    %82 = vector.broadcast %81 : vector<16x1xi1> to vector<16x32xi1>
    %83 = arith.select %82, %70, %46 : vector<16x32xi1>, vector<16x32xf32>
    %c2_i32 = arith.constant 2 : i32
    %c16_i32_31 = arith.constant 16 : i32
    %84 = arith.muli %c2_i32, %c16_i32_31 : i32
    %85 = tpu.assume_multiple %84, 16 : i32
    %86 = arith.index_cast %85 : i32 to index
    %c0_32 = arith.constant 0 : index
    %87 = vector.load %arg9[%86, %c0_32] : memref<128x128xf32, #tpu.memory_space<vmem>>, vector<16x128xf32>
    %88 = arith.truncf %80 : vector<16x32xf32> to vector<16x32xbf16>
    %c0_33 = arith.constant 0 : index
    %c0_34 = arith.constant 0 : index
    %89 = vector.load %arg4[%c0_33, %c0_34] : memref<32x128xbf16, #tpu.memory_space<vmem>>, vector<32x128xbf16>
    %cst_35 = arith.constant dense<0.000000e+00> : vector<16x128xf32>
    %90 = tpu.matmul %88, %89, %cst_35 {dimension_numbers = #tpu.dot_dimension_numbers<[1], [0], [0], [1], [0, 0, 1, 1], [], []>} : vector<16x32xbf16>, vector<32x128xbf16>, vector<16x128xf32> -> vector<16x128xf32>
    %91 = arith.addf %87, %90 : vector<16x128xf32>
    %92 = arith.negf %91 : vector<16x128xf32>
    %93 = math.exp %92 : vector<16x128xf32>
    %cst_36 = arith.constant 1.000000e+00 : f32
    %94 = vector.broadcast %cst_36 : f32 to vector<16x128xf32>
    %95 = arith.addf %94, %93 : vector<16x128xf32>
    %96 = arith.divf %94, %95 : vector<16x128xf32>
    %97 = vector.extract_strided_slice %96 {offsets = [0, 0], sizes = [16, 32], strides = [1, 1]} : vector<16x128xf32> to vector<16x32xf32>
    %98 = vector.extract_strided_slice %96 {offsets = [0, 32], sizes = [16, 32], strides = [1, 1]} : vector<16x128xf32> to vector<16x32xf32>
    %99 = vector.extract_strided_slice %96 {offsets = [0, 64], sizes = [16, 32], strides = [1, 1]} : vector<16x128xf32> to vector<16x32xf32>
    %cst_37 = arith.constant 2.000000e+00 : f32
    %100 = vector.broadcast %cst_37 : f32 to vector<16x32xf32>
    %101 = arith.mulf %100, %99 : vector<16x32xf32>
    %cst_38 = arith.constant 1.000000e+00 : f32
    %102 = vector.broadcast %cst_38 : f32 to vector<16x32xf32>
    %103 = arith.subf %101, %102 : vector<16x32xf32>
    %104 = vector.extract_strided_slice %96 {offsets = [0, 96], sizes = [16, 32], strides = [1, 1]} : vector<16x128xf32> to vector<16x32xf32>
    %105 = arith.mulf %98, %83 : vector<16x32xf32>
    %106 = arith.mulf %97, %103 : vector<16x32xf32>
    %107 = arith.addf %105, %106 : vector<16x32xf32>
    %108 = math.tanh %107 : vector<16x32xf32>
    %109 = arith.mulf %104, %108 : vector<16x32xf32>
    %110 = arith.index_cast %c2_i32 : i32 to index
    %c0_39 = arith.constant 0 : index
    %c0_40 = arith.constant 0 : index
    %111 = vector.load %arg2[%110, %c0_39, %c0_40] : memref<8x16x1xf32, #tpu.memory_space<vmem>>, vector<1x16x1xf32>
    %112 = vector.shape_cast %111 : vector<1x16x1xf32> to vector<16x1xf32>
    %cst_41 = arith.constant 0.000000e+00 : f32
    %113 = vector.broadcast %cst_41 : f32 to vector<16x1xf32>
    %114 = arith.cmpf ogt, %112, %113 : vector<16x1xf32>
    %115 = vector.shape_cast %114 : vector<16x1xi1> to vector<16x1xi1>
    %116 = vector.broadcast %115 : vector<16x1xi1> to vector<16x32xi1>
    %117 = arith.select %116, %109, %80 : vector<16x32xi1>, vector<16x32xf32>
    %118 = vector.shape_cast %114 : vector<16x1xi1> to vector<16x1xi1>
    %119 = vector.broadcast %118 : vector<16x1xi1> to vector<16x32xi1>
    %120 = arith.select %119, %107, %83 : vector<16x32xi1>, vector<16x32xf32>
    %c3_i32 = arith.constant 3 : i32
    %c16_i32_42 = arith.constant 16 : i32
    %121 = arith.muli %c3_i32, %c16_i32_42 : i32
    %122 = tpu.assume_multiple %121, 16 : i32
    %123 = arith.index_cast %122 : i32 to index
    %c0_43 = arith.constant 0 : index
    %124 = vector.load %arg9[%123, %c0_43] : memref<128x128xf32, #tpu.memory_space<vmem>>, vector<16x128xf32>
    %125 = arith.truncf %117 : vector<16x32xf32> to vector<16x32xbf16>
    %c0_44 = arith.constant 0 : index
    %c0_45 = arith.constant 0 : index
    %126 = vector.load %arg4[%c0_44, %c0_45] : memref<32x128xbf16, #tpu.memory_space<vmem>>, vector<32x128xbf16>
    %cst_46 = arith.constant dense<0.000000e+00> : vector<16x128xf32>
    %127 = tpu.matmul %125, %126, %cst_46 {dimension_numbers = #tpu.dot_dimension_numbers<[1], [0], [0], [1], [0, 0, 1, 1], [], []>} : vector<16x32xbf16>, vector<32x128xbf16>, vector<16x128xf32> -> vector<16x128xf32>
    %128 = arith.addf %124, %127 : vector<16x128xf32>
    %129 = arith.negf %128 : vector<16x128xf32>
    %130 = math.exp %129 : vector<16x128xf32>
    %cst_47 = arith.constant 1.000000e+00 : f32
    %131 = vector.broadcast %cst_47 : f32 to vector<16x128xf32>
    %132 = arith.addf %131, %130 : vector<16x128xf32>
    %133 = arith.divf %131, %132 : vector<16x128xf32>
    %134 = vector.extract_strided_slice %133 {offsets = [0, 0], sizes = [16, 32], strides = [1, 1]} : vector<16x128xf32> to vector<16x32xf32>
    %135 = vector.extract_strided_slice %133 {offsets = [0, 32], sizes = [16, 32], strides = [1, 1]} : vector<16x128xf32> to vector<16x32xf32>
    %136 = vector.extract_strided_slice %133 {offsets = [0, 64], sizes = [16, 32], strides = [1, 1]} : vector<16x128xf32> to vector<16x32xf32>
    %cst_48 = arith.constant 2.000000e+00 : f32
    %137 = vector.broadcast %cst_48 : f32 to vector<16x32xf32>
    %138 = arith.mulf %137, %136 : vector<16x32xf32>
    %cst_49 = arith.constant 1.000000e+00 : f32
    %139 = vector.broadcast %cst_49 : f32 to vector<16x32xf32>
    %140 = arith.subf %138, %139 : vector<16x32xf32>
    %141 = vector.extract_strided_slice %133 {offsets = [0, 96], sizes = [16, 32], strides = [1, 1]} : vector<16x128xf32> to vector<16x32xf32>
    %142 = arith.mulf %135, %120 : vector<16x32xf32>
    %143 = arith.mulf %134, %140 : vector<16x32xf32>
    %144 = arith.addf %142, %143 : vector<16x32xf32>
    %145 = math.tanh %144 : vector<16x32xf32>
    %146 = arith.mulf %141, %145 : vector<16x32xf32>
    %147 = arith.index_cast %c3_i32 : i32 to index
    %c0_50 = arith.constant 0 : index
    %c0_51 = arith.constant 0 : index
    %148 = vector.load %arg2[%147, %c0_50, %c0_51] : memref<8x16x1xf32, #tpu.memory_space<vmem>>, vector<1x16x1xf32>
    %149 = vector.shape_cast %148 : vector<1x16x1xf32> to vector<16x1xf32>
    %cst_52 = arith.constant 0.000000e+00 : f32
    %150 = vector.broadcast %cst_52 : f32 to vector<16x1xf32>
    %151 = arith.cmpf ogt, %149, %150 : vector<16x1xf32>
    %152 = vector.shape_cast %151 : vector<16x1xi1> to vector<16x1xi1>
    %153 = vector.broadcast %152 : vector<16x1xi1> to vector<16x32xi1>
    %154 = arith.select %153, %146, %117 : vector<16x32xi1>, vector<16x32xf32>
    %155 = vector.shape_cast %151 : vector<16x1xi1> to vector<16x1xi1>
    %156 = vector.broadcast %155 : vector<16x1xi1> to vector<16x32xi1>
    %157 = arith.select %156, %144, %120 : vector<16x32xi1>, vector<16x32xf32>
    %c4_i32 = arith.constant 4 : i32
    %c16_i32_53 = arith.constant 16 : i32
    %158 = arith.muli %c4_i32, %c16_i32_53 : i32
    %159 = tpu.assume_multiple %158, 16 : i32
    %160 = arith.index_cast %159 : i32 to index
    %c0_54 = arith.constant 0 : index
    %161 = vector.load %arg9[%160, %c0_54] : memref<128x128xf32, #tpu.memory_space<vmem>>, vector<16x128xf32>
    %162 = arith.truncf %154 : vector<16x32xf32> to vector<16x32xbf16>
    %c0_55 = arith.constant 0 : index
    %c0_56 = arith.constant 0 : index
    %163 = vector.load %arg4[%c0_55, %c0_56] : memref<32x128xbf16, #tpu.memory_space<vmem>>, vector<32x128xbf16>
    %cst_57 = arith.constant dense<0.000000e+00> : vector<16x128xf32>
    %164 = tpu.matmul %162, %163, %cst_57 {dimension_numbers = #tpu.dot_dimension_numbers<[1], [0], [0], [1], [0, 0, 1, 1], [], []>} : vector<16x32xbf16>, vector<32x128xbf16>, vector<16x128xf32> -> vector<16x128xf32>
    %165 = arith.addf %161, %164 : vector<16x128xf32>
    %166 = arith.negf %165 : vector<16x128xf32>
    %167 = math.exp %166 : vector<16x128xf32>
    %cst_58 = arith.constant 1.000000e+00 : f32
    %168 = vector.broadcast %cst_58 : f32 to vector<16x128xf32>
    %169 = arith.addf %168, %167 : vector<16x128xf32>
    %170 = arith.divf %168, %169 : vector<16x128xf32>
    %171 = vector.extract_strided_slice %170 {offsets = [0, 0], sizes = [16, 32], strides = [1, 1]} : vector<16x128xf32> to vector<16x32xf32>
    %172 = vector.extract_strided_slice %170 {offsets = [0, 32], sizes = [16, 32], strides = [1, 1]} : vector<16x128xf32> to vector<16x32xf32>
    %173 = vector.extract_strided_slice %170 {offsets = [0, 64], sizes = [16, 32], strides = [1, 1]} : vector<16x128xf32> to vector<16x32xf32>
    %cst_59 = arith.constant 2.000000e+00 : f32
    %174 = vector.broadcast %cst_59 : f32 to vector<16x32xf32>
    %175 = arith.mulf %174, %173 : vector<16x32xf32>
    %cst_60 = arith.constant 1.000000e+00 : f32
    %176 = vector.broadcast %cst_60 : f32 to vector<16x32xf32>
    %177 = arith.subf %175, %176 : vector<16x32xf32>
    %178 = vector.extract_strided_slice %170 {offsets = [0, 96], sizes = [16, 32], strides = [1, 1]} : vector<16x128xf32> to vector<16x32xf32>
    %179 = arith.mulf %172, %157 : vector<16x32xf32>
    %180 = arith.mulf %171, %177 : vector<16x32xf32>
    %181 = arith.addf %179, %180 : vector<16x32xf32>
    %182 = math.tanh %181 : vector<16x32xf32>
    %183 = arith.mulf %178, %182 : vector<16x32xf32>
    %184 = arith.index_cast %c4_i32 : i32 to index
    %c0_61 = arith.constant 0 : index
    %c0_62 = arith.constant 0 : index
    %185 = vector.load %arg2[%184, %c0_61, %c0_62] : memref<8x16x1xf32, #tpu.memory_space<vmem>>, vector<1x16x1xf32>
    %186 = vector.shape_cast %185 : vector<1x16x1xf32> to vector<16x1xf32>
    %cst_63 = arith.constant 0.000000e+00 : f32
    %187 = vector.broadcast %cst_63 : f32 to vector<16x1xf32>
    %188 = arith.cmpf ogt, %186, %187 : vector<16x1xf32>
    %189 = vector.shape_cast %188 : vector<16x1xi1> to vector<16x1xi1>
    %190 = vector.broadcast %189 : vector<16x1xi1> to vector<16x32xi1>
    %191 = arith.select %190, %183, %154 : vector<16x32xi1>, vector<16x32xf32>
    %192 = vector.shape_cast %188 : vector<16x1xi1> to vector<16x1xi1>
    %193 = vector.broadcast %192 : vector<16x1xi1> to vector<16x32xi1>
    %194 = arith.select %193, %181, %157 : vector<16x32xi1>, vector<16x32xf32>
    %c5_i32 = arith.constant 5 : i32
    %c16_i32_64 = arith.constant 16 : i32
    %195 = arith.muli %c5_i32, %c16_i32_64 : i32
    %196 = tpu.assume_multiple %195, 16 : i32
    %197 = arith.index_cast %196 : i32 to index
    %c0_65 = arith.constant 0 : index
    %198 = vector.load %arg9[%197, %c0_65] : memref<128x128xf32, #tpu.memory_space<vmem>>, vector<16x128xf32>
    %199 = arith.truncf %191 : vector<16x32xf32> to vector<16x32xbf16>
    %c0_66 = arith.constant 0 : index
    %c0_67 = arith.constant 0 : index
    %200 = vector.load %arg4[%c0_66, %c0_67] : memref<32x128xbf16, #tpu.memory_space<vmem>>, vector<32x128xbf16>
    %cst_68 = arith.constant dense<0.000000e+00> : vector<16x128xf32>
    %201 = tpu.matmul %199, %200, %cst_68 {dimension_numbers = #tpu.dot_dimension_numbers<[1], [0], [0], [1], [0, 0, 1, 1], [], []>} : vector<16x32xbf16>, vector<32x128xbf16>, vector<16x128xf32> -> vector<16x128xf32>
    %202 = arith.addf %198, %201 : vector<16x128xf32>
    %203 = arith.negf %202 : vector<16x128xf32>
    %204 = math.exp %203 : vector<16x128xf32>
    %cst_69 = arith.constant 1.000000e+00 : f32
    %205 = vector.broadcast %cst_69 : f32 to vector<16x128xf32>
    %206 = arith.addf %205, %204 : vector<16x128xf32>
    %207 = arith.divf %205, %206 : vector<16x128xf32>
    %208 = vector.extract_strided_slice %207 {offsets = [0, 0], sizes = [16, 32], strides = [1, 1]} : vector<16x128xf32> to vector<16x32xf32>
    %209 = vector.extract_strided_slice %207 {offsets = [0, 32], sizes = [16, 32], strides = [1, 1]} : vector<16x128xf32> to vector<16x32xf32>
    %210 = vector.extract_strided_slice %207 {offsets = [0, 64], sizes = [16, 32], strides = [1, 1]} : vector<16x128xf32> to vector<16x32xf32>
    %cst_70 = arith.constant 2.000000e+00 : f32
    %211 = vector.broadcast %cst_70 : f32 to vector<16x32xf32>
    %212 = arith.mulf %211, %210 : vector<16x32xf32>
    %cst_71 = arith.constant 1.000000e+00 : f32
    %213 = vector.broadcast %cst_71 : f32 to vector<16x32xf32>
    %214 = arith.subf %212, %213 : vector<16x32xf32>
    %215 = vector.extract_strided_slice %207 {offsets = [0, 96], sizes = [16, 32], strides = [1, 1]} : vector<16x128xf32> to vector<16x32xf32>
    %216 = arith.mulf %209, %194 : vector<16x32xf32>
    %217 = arith.mulf %208, %214 : vector<16x32xf32>
    %218 = arith.addf %216, %217 : vector<16x32xf32>
    %219 = math.tanh %218 : vector<16x32xf32>
    %220 = arith.mulf %215, %219 : vector<16x32xf32>
    %221 = arith.index_cast %c5_i32 : i32 to index
    %c0_72 = arith.constant 0 : index
    %c0_73 = arith.constant 0 : index
    %222 = vector.load %arg2[%221, %c0_72, %c0_73] : memref<8x16x1xf32, #tpu.memory_space<vmem>>, vector<1x16x1xf32>
    %223 = vector.shape_cast %222 : vector<1x16x1xf32> to vector<16x1xf32>
    %cst_74 = arith.constant 0.000000e+00 : f32
    %224 = vector.broadcast %cst_74 : f32 to vector<16x1xf32>
    %225 = arith.cmpf ogt, %223, %224 : vector<16x1xf32>
    %226 = vector.shape_cast %225 : vector<16x1xi1> to vector<16x1xi1>
    %227 = vector.broadcast %226 : vector<16x1xi1> to vector<16x32xi1>
    %228 = arith.select %227, %220, %191 : vector<16x32xi1>, vector<16x32xf32>
    %229 = vector.shape_cast %225 : vector<16x1xi1> to vector<16x1xi1>
    %230 = vector.broadcast %229 : vector<16x1xi1> to vector<16x32xi1>
    %231 = arith.select %230, %218, %194 : vector<16x32xi1>, vector<16x32xf32>
    %c6_i32 = arith.constant 6 : i32
    %c16_i32_75 = arith.constant 16 : i32
    %232 = arith.muli %c6_i32, %c16_i32_75 : i32
    %233 = tpu.assume_multiple %232, 16 : i32
    %234 = arith.index_cast %233 : i32 to index
    %c0_76 = arith.constant 0 : index
    %235 = vector.load %arg9[%234, %c0_76] : memref<128x128xf32, #tpu.memory_space<vmem>>, vector<16x128xf32>
    %236 = arith.truncf %228 : vector<16x32xf32> to vector<16x32xbf16>
    %c0_77 = arith.constant 0 : index
    %c0_78 = arith.constant 0 : index
    %237 = vector.load %arg4[%c0_77, %c0_78] : memref<32x128xbf16, #tpu.memory_space<vmem>>, vector<32x128xbf16>
    %cst_79 = arith.constant dense<0.000000e+00> : vector<16x128xf32>
    %238 = tpu.matmul %236, %237, %cst_79 {dimension_numbers = #tpu.dot_dimension_numbers<[1], [0], [0], [1], [0, 0, 1, 1], [], []>} : vector<16x32xbf16>, vector<32x128xbf16>, vector<16x128xf32> -> vector<16x128xf32>
    %239 = arith.addf %235, %238 : vector<16x128xf32>
    %240 = arith.negf %239 : vector<16x128xf32>
    %241 = math.exp %240 : vector<16x128xf32>
    %cst_80 = arith.constant 1.000000e+00 : f32
    %242 = vector.broadcast %cst_80 : f32 to vector<16x128xf32>
    %243 = arith.addf %242, %241 : vector<16x128xf32>
    %244 = arith.divf %242, %243 : vector<16x128xf32>
    %245 = vector.extract_strided_slice %244 {offsets = [0, 0], sizes = [16, 32], strides = [1, 1]} : vector<16x128xf32> to vector<16x32xf32>
    %246 = vector.extract_strided_slice %244 {offsets = [0, 32], sizes = [16, 32], strides = [1, 1]} : vector<16x128xf32> to vector<16x32xf32>
    %247 = vector.extract_strided_slice %244 {offsets = [0, 64], sizes = [16, 32], strides = [1, 1]} : vector<16x128xf32> to vector<16x32xf32>
    %cst_81 = arith.constant 2.000000e+00 : f32
    %248 = vector.broadcast %cst_81 : f32 to vector<16x32xf32>
    %249 = arith.mulf %248, %247 : vector<16x32xf32>
    %cst_82 = arith.constant 1.000000e+00 : f32
    %250 = vector.broadcast %cst_82 : f32 to vector<16x32xf32>
    %251 = arith.subf %249, %250 : vector<16x32xf32>
    %252 = vector.extract_strided_slice %244 {offsets = [0, 96], sizes = [16, 32], strides = [1, 1]} : vector<16x128xf32> to vector<16x32xf32>
    %253 = arith.mulf %246, %231 : vector<16x32xf32>
    %254 = arith.mulf %245, %251 : vector<16x32xf32>
    %255 = arith.addf %253, %254 : vector<16x32xf32>
    %256 = math.tanh %255 : vector<16x32xf32>
    %257 = arith.mulf %252, %256 : vector<16x32xf32>
    %258 = arith.index_cast %c6_i32 : i32 to index
    %c0_83 = arith.constant 0 : index
    %c0_84 = arith.constant 0 : index
    %259 = vector.load %arg2[%258, %c0_83, %c0_84] : memref<8x16x1xf32, #tpu.memory_space<vmem>>, vector<1x16x1xf32>
    %260 = vector.shape_cast %259 : vector<1x16x1xf32> to vector<16x1xf32>
    %cst_85 = arith.constant 0.000000e+00 : f32
    %261 = vector.broadcast %cst_85 : f32 to vector<16x1xf32>
    %262 = arith.cmpf ogt, %260, %261 : vector<16x1xf32>
    %263 = vector.shape_cast %262 : vector<16x1xi1> to vector<16x1xi1>
    %264 = vector.broadcast %263 : vector<16x1xi1> to vector<16x32xi1>
    %265 = arith.select %264, %257, %228 : vector<16x32xi1>, vector<16x32xf32>
    %266 = vector.shape_cast %262 : vector<16x1xi1> to vector<16x1xi1>
    %267 = vector.broadcast %266 : vector<16x1xi1> to vector<16x32xi1>
    %268 = arith.select %267, %255, %231 : vector<16x32xi1>, vector<16x32xf32>
    %c7_i32 = arith.constant 7 : i32
    %c16_i32_86 = arith.constant 16 : i32
    %269 = arith.muli %c7_i32, %c16_i32_86 : i32
    %270 = tpu.assume_multiple %269, 16 : i32
    %271 = arith.index_cast %270 : i32 to index
    %c0_87 = arith.constant 0 : index
    %272 = vector.load %arg9[%271, %c0_87] : memref<128x128xf32, #tpu.memory_space<vmem>>, vector<16x128xf32>
    %273 = arith.truncf %265 : vector<16x32xf32> to vector<16x32xbf16>
    %c0_88 = arith.constant 0 : index
    %c0_89 = arith.constant 0 : index
    %274 = vector.load %arg4[%c0_88, %c0_89] : memref<32x128xbf16, #tpu.memory_space<vmem>>, vector<32x128xbf16>
    %cst_90 = arith.constant dense<0.000000e+00> : vector<16x128xf32>
    %275 = tpu.matmul %273, %274, %cst_90 {dimension_numbers = #tpu.dot_dimension_numbers<[1], [0], [0], [1], [0, 0, 1, 1], [], []>} : vector<16x32xbf16>, vector<32x128xbf16>, vector<16x128xf32> -> vector<16x128xf32>
    %276 = arith.addf %272, %275 : vector<16x128xf32>
    %277 = arith.negf %276 : vector<16x128xf32>
    %278 = math.exp %277 : vector<16x128xf32>
    %cst_91 = arith.constant 1.000000e+00 : f32
    %279 = vector.broadcast %cst_91 : f32 to vector<16x128xf32>
    %280 = arith.addf %279, %278 : vector<16x128xf32>
    %281 = arith.divf %279, %280 : vector<16x128xf32>
    %282 = vector.extract_strided_slice %281 {offsets = [0, 0], sizes = [16, 32], strides = [1, 1]} : vector<16x128xf32> to vector<16x32xf32>
    %283 = vector.extract_strided_slice %281 {offsets = [0, 32], sizes = [16, 32], strides = [1, 1]} : vector<16x128xf32> to vector<16x32xf32>
    %284 = vector.extract_strided_slice %281 {offsets = [0, 64], sizes = [16, 32], strides = [1, 1]} : vector<16x128xf32> to vector<16x32xf32>
    %cst_92 = arith.constant 2.000000e+00 : f32
    %285 = vector.broadcast %cst_92 : f32 to vector<16x32xf32>
    %286 = arith.mulf %285, %284 : vector<16x32xf32>
    %cst_93 = arith.constant 1.000000e+00 : f32
    %287 = vector.broadcast %cst_93 : f32 to vector<16x32xf32>
    %288 = arith.subf %286, %287 : vector<16x32xf32>
    %289 = vector.extract_strided_slice %281 {offsets = [0, 96], sizes = [16, 32], strides = [1, 1]} : vector<16x128xf32> to vector<16x32xf32>
    %290 = arith.mulf %283, %268 : vector<16x32xf32>
    %291 = arith.mulf %282, %288 : vector<16x32xf32>
    %292 = arith.addf %290, %291 : vector<16x32xf32>
    %293 = math.tanh %292 : vector<16x32xf32>
    %294 = arith.mulf %289, %293 : vector<16x32xf32>
    %295 = arith.index_cast %c7_i32 : i32 to index
    %c0_94 = arith.constant 0 : index
    %c0_95 = arith.constant 0 : index
    %296 = vector.load %arg2[%295, %c0_94, %c0_95] : memref<8x16x1xf32, #tpu.memory_space<vmem>>, vector<1x16x1xf32>
    %297 = vector.shape_cast %296 : vector<1x16x1xf32> to vector<16x1xf32>
    %cst_96 = arith.constant 0.000000e+00 : f32
    %298 = vector.broadcast %cst_96 : f32 to vector<16x1xf32>
    %299 = arith.cmpf ogt, %297, %298 : vector<16x1xf32>
    %300 = vector.shape_cast %299 : vector<16x1xi1> to vector<16x1xi1>
    %301 = vector.broadcast %300 : vector<16x1xi1> to vector<16x32xi1>
    %302 = arith.select %301, %294, %265 : vector<16x32xi1>, vector<16x32xf32>
    %303 = vector.shape_cast %299 : vector<16x1xi1> to vector<16x1xi1>
    %304 = vector.broadcast %303 : vector<16x1xi1> to vector<16x32xi1>
    %305 = arith.select %304, %292, %268 : vector<16x32xi1>, vector<16x32xf32>
    %c8_i32 = arith.constant 8 : i32
    %306 = arith.truncf %302 : vector<16x32xf32> to vector<16x32xbf16>
    %c0_97 = arith.constant 0 : index
    %c0_98 = arith.constant 0 : index
    %307 = vector.load %arg6[%c0_97, %c0_98] : memref<32x128xbf16, #tpu.memory_space<vmem>>, vector<32x128xbf16>
    %cst_99 = arith.constant dense<0.000000e+00> : vector<16x128xf32>
    %308 = tpu.matmul %306, %307, %cst_99 {dimension_numbers = #tpu.dot_dimension_numbers<[1], [0], [0], [1], [0, 0, 1, 1], [], []>} : vector<16x32xbf16>, vector<32x128xbf16>, vector<16x128xf32> -> vector<16x128xf32>
    %c0_100 = arith.constant 0 : index
    %c0_101 = arith.constant 0 : index
    %309 = vector.load %arg7[%c0_100, %c0_101] : memref<1x128xf32, #tpu.memory_space<vmem>>, vector<1x128xf32>
    %310 = vector.broadcast %309 : vector<1x128xf32> to vector<16x128xf32>
    %311 = arith.addf %308, %310 : vector<16x128xf32>
    %c0_102 = arith.constant 0 : index
    %c0_103 = arith.constant 0 : index
    %312 = vector.load %arg8[%c0_102, %c0_103] : memref<16x128xf32, #tpu.memory_space<vmem>>, vector<16x128xf32>
    tpu.vector_store %arg8[%c0_102, %c0_103], %311 {strides = array<i32>} : memref<16x128xf32, #tpu.memory_space<vmem>>, vector<16x128xf32>,
    return
  }
  func.func @transform_0(%arg0: i32) -> (i32, i32, i32) {
    %c0_i32 = arith.constant 0 : i32
    %c0_i32_0 = arith.constant 0 : i32
    %c0_i32_1 = arith.constant 0 : i32
    return %c0_i32, %arg0, %c0_i32_0 : i32, i32, i32
  }
  func.func @transform_1(%arg0: i32) -> (i32, i32, i32) {
    %c0_i32 = arith.constant 0 : i32
    %c0_i32_0 = arith.constant 0 : i32
    %c0_i32_1 = arith.constant 0 : i32
    return %c0_i32, %arg0, %c0_i32_0 : i32, i32, i32
  }
  func.func @transform_2(%arg0: i32) -> (i32, i32) {
    %c0_i32 = arith.constant 0 : i32
    %c0_i32_0 = arith.constant 0 : i32
    %c0_i32_1 = arith.constant 0 : i32
    return %c0_i32, %c0_i32_0 : i32, i32
  }
  func.func @transform_3(%arg0: i32) -> (i32, i32) {
    %c0_i32 = arith.constant 0 : i32
    %c0_i32_0 = arith.constant 0 : i32
    %c0_i32_1 = arith.constant 0 : i32
    return %c0_i32, %c0_i32_0 : i32, i32
  }
  func.func @transform_4(%arg0: i32) -> (i32, i32) {
    %c0_i32 = arith.constant 0 : i32
    %c0_i32_0 = arith.constant 0 : i32
    %c0_i32_1 = arith.constant 0 : i32
    return %c0_i32, %c0_i32_0 : i32, i32
  }
  func.func @transform_5(%arg0: i32) -> (i32, i32) {
    %c0_i32 = arith.constant 0 : i32
    %c0_i32_0 = arith.constant 0 : i32
    %c0_i32_1 = arith.constant 0 : i32
    return %c0_i32, %c0_i32_0 : i32, i32
  }
  func.func @transform_6(%arg0: i32) -> (i32, i32) {
    %c0_i32 = arith.constant 0 : i32
    %c0_i32_0 = arith.constant 0 : i32
    %c0_i32_1 = arith.constant 0 : i32
    return %c0_i32, %c0_i32_0 : i32, i32
  }
  func.func @transform_7(%arg0: i32) -> (i32, i32) {
    %c0_i32 = arith.constant 0 : i32
    %c0_i32_0 = arith.constant 0 : i32
    return %arg0, %c0_i32 : i32, i32
  }
}

</mosaic_0001>

<bundles_post_ra>
// kernel: tpu_custom_call.1
= control target key start
LH: loop header
LB: loop body
LE: loop exit
PB: predicated region body
PF: predicated region fallthrough
CT: control target
= control target key end

     0   :  { %12 = vsyncpa [#allocation6], 0  ;;  %s2773_s0 = inlined_call_operand.vmem [shape: bf16[8,32,16], index: 0, kind: input, shape index: {}]   ;;  %s2774_s1 = inlined_call_operand.vmem [shape: f32[8,32,1], index: 1, kind: input, shape index: {}]   ;;  %s2775_s2 = inlined_call_operand.vmem [shape: bf16[16,128], index: 2, kind: input, shape index: {}]   ;;  %s2776_s3 = inlined_call_operand.vmem [shape: bf16[32,128], index: 3, kind: input, shape index: {}]   ;;  %s2777_s4 = inlined_call_operand.vmem [shape: f32[1,128], index: 4, kind: input, shape index: {}]   ;;  %s2778_s5 = inlined_call_operand.vmem [shape: bf16[32,128], index: 5, kind: input, shape index: {}]   ;;  %s2779_s6 = inlined_call_operand.vmem [shape: f32[1,128], index: 6, kind: input, shape index: {}]   ;;  %s2780_s7 = inlined_call_operand.hbm [shape: f32[32,128], index: 7, kind: output, shape index: {}]  }
   0x1   :  { %14 = vsyncpa [#allocation6 + $0x1], 0  ;;  %s2186_s24 = smov 0   ;;  %s2188_s25 = smov 0  }
   0x2   :  { %s2190_s26 = smov 0   ;;  %s2192_s27 = smov 0  }
   0x3 LB: > { %s1780_s28 = sadd.s32 4294967295, %s2139_s27   ;;  %s1781_s29 = sadd.s32 4294967294, %s2139_s27   ;;  %s2139_s27 = sphi %s2192_s27, %s2787_s27   ;;  %s2135_s26 = sphi %s2190_s26, %s2786_s26   ;;  %s2131_s25 = sphi %s2188_s25, %s2785_s25   ;;  %s2127_s24 = sphi %s2186_s24, %s2784_s24  }
   0x4   : > { %s2209_s30 = sadd.s32 1, %s2139_s27   ;;  %s27_s8 = sadd.s32 1, %s2135_s26 }
   0x5   : > { %s24_s9 = ssub.s32 %s2139_s27, %s2209_s30  ;;  %p34_p0 = scmp.ne.s32.totalorder %s2135_s26, %s2131_s25 }
   0x6   : > { %p25_p1 = scmp.eq.s32.totalorder %s24_s9, 0  ;;  %p35_p2 = scmp.eq.s32.totalorder %s2139_s27, 0 }
   0x7   : > { %p195_p3 = scmp.eq.s32.totalorder %s1780_s28, 1  ;;  %p200_p4 = scmp.ne.s32.totalorder %s2131_s25, %s2127_s24 }
   0x8   : > { %s2222_s10 = scalar_select %p25_p1, %s2135_s26, %s27_s8  }
   0x9   : > { %p2224_p5 = por %p35_p2, %p34_p0  ;;  %p2228_p6 = por %p195_p3, %p34_p0 }
   0xa   : > { %p201_p7 = scmp.eq.s32.totalorder %s1781_s29, 1  ;;  %p1783_p9 = scmp.ge.s32.totalorder %s2139_s27, 2 }
   0xc   : > { %p2232_p8 = por %p201_p7, %p200_p4  ;;  %232 = sbr.rel (%p1783_p9) target bundleno = 49 (0x31), region = 36 }
  0x11   : > { %235 = sbr.rel (!%p2224_p5) target bundleno = 29 (0x1d), region = 40  ;;  %s237_s14 = sand.u32 (%p2224_p5), 1, %s2135_s26  }
  0x12   : > { %s1913_s15 = sshll.u32 (%p2224_p5), %s2139_s27, 3  ;;  %s1784_s16 = sshll.u32 (%p2224_p5), %s237_s14, 6 }
  0x13   : > { %s242_s19 = scalar_lea.vmem (%p2224_p5), %s2773_s0, %s1913_s15  ;;  %s239_s20 = scalar_lea.vmem (%p2224_p5), [#allocation3], %s1784_s16 }
  0x14   : > { %v259_v0 = vld [vmem:[%s242_s19] sm:$0xff] (%p2224_p5)   ;;  %v263_v1 = vld [vmem:[%s242_s19 + $0x10] sm:$0xff] (%p2224_p5)  }
  0x15   : > { %v267_v2 = vld [vmem:[%s242_s19 + $0x20] sm:$0xff] (%p2224_p5)   ;;  %260 = vst [vmem:[%s239_s20] sm:$0xff] (%p2224_p5), %v259_v0   ;;  %v271_v3 = vld [vmem:[%s242_s19 + $0x30] sm:$0xff] (%p2224_p5)  }
  0x16   : > { %264 = vst [vmem:[%s239_s20 + $0x8] sm:$0xff] %v263_v1   ;;  %v275_v4 = vld [vmem:[%s242_s19 + $0x40] sm:$0xff]   ;;  %v279_v5 = vld [vmem:[%s242_s19 + $0x50] sm:$0xff]  }
  0x17   : > { %268 = vst [vmem:[%s239_s20 + $0x10] sm:$0xff] %v267_v2   ;;  %v283_v6 = vld [vmem:[%s242_s19 + $0x60] sm:$0xff]   ;;  %v287_v7 = vld [vmem:[%s242_s19 + $0x70] sm:$0xff]  }
  0x18   : > { %272 = vst [vmem:[%s239_s20 + $0x18] sm:$0xff] %v271_v3  }
  0x19   : > { %276 = vst [vmem:[%s239_s20 + $0x20] sm:$0xff] %v275_v4  }
  0x1a   : > { %280 = vst [vmem:[%s239_s20 + $0x28] sm:$0xff] %v279_v5  }
  0x1b   : > { %284 = vst [vmem:[%s239_s20 + $0x30] sm:$0xff] %v283_v6  }
  0x1c   : > { %288 = vst [vmem:[%s239_s20 + $0x38] sm:$0xff] %v287_v7  }
  0x1d PF: > { %346 = sbr.rel (!%p2224_p5) target bundleno = 49 (0x31), region = 81  ;;  %s348_s21 = sand.u32 (%p2224_p5), 1, %s2135_s26  }
  0x1e   : > { %s1914_s22 = sshll.u32 (%p2224_p5), %s2139_s27, 4  ;;  %s1787_s23 = sshll.u32 (%p2224_p5), %s348_s21, 7 }
  0x1f   : > { %s2253_s9 = scalar_lea.vmem (%p2224_p5), %s2774_s1, %s1914_s22  ;;  %s350_s11 = scalar_lea.vmem (%p2224_p5), [#allocation4], %s1787_s23 }
  0x20   : > { %v412_v8 = vld [vmem:[%s2253_s9] sm:$0xff] (%p2224_p5)  ;;  %v414_v9 = vld [vmem:[%s2253_s9 + $0x8] sm:$0xff] (%p2224_p5) }
  0x21   : > { %v416_v10 = vld [vmem:[%s2253_s9 + $0x20] sm:$0xff] (%p2224_p5)  ;;  %413 = vst [vmem:[%s350_s11] sm:$0xff] (%p2224_p5), %v412_v8  ;;  %v418_v11 = vld [vmem:[%s2253_s9 + $0x28] sm:$0xff] (%p2224_p5) }
  0x22   : > { %415 = vst [vmem:[%s350_s11 + $0x8] sm:$0xff] %v414_v9  ;;  %v420_v12 = vld [vmem:[%s2253_s9 + $0x40] sm:$0xff]  ;;  %v422_v13 = vld [vmem:[%s2253_s9 + $0x48] sm:$0xff] }
  0x23   : > { %417 = vst [vmem:[%s350_s11 + $0x10] sm:$0xff] %v416_v10  ;;  %v424_v14 = vld [vmem:[%s2253_s9 + $0x60] sm:$0xff]  ;;  %v426_v15 = vld [vmem:[%s2253_s9 + $0x68] sm:$0xff] }
  0x24   : > { %419 = vst [vmem:[%s350_s11 + $0x18] sm:$0xff] %v418_v11  ;;  %v428_v16 = vld [vmem:[%s2253_s9 + $0x80] sm:$0xff]  ;;  %v430_v17 = vld [vmem:[%s2253_s9 + $0x88] sm:$0xff] }
  0x25   : > { %421 = vst [vmem:[%s350_s11 + $0x20] sm:$0xff] %v420_v12  ;;  %v432_v18 = vld [vmem:[%s2253_s9 + $0xa0] sm:$0xff]  ;;  %v434_v19 = vld [vmem:[%s2253_s9 + $0xa8] sm:$0xff] }
  0x26   : > { %423 = vst [vmem:[%s350_s11 + $0x28] sm:$0xff] %v422_v13  ;;  %v436_v20 = vld [vmem:[%s2253_s9 + $0xc0] sm:$0xff]  ;;  %v438_v21 = vld [vmem:[%s2253_s9 + $0xc8] sm:$0xff] }
  0x27   : > { %425 = vst [vmem:[%s350_s11 + $0x30] sm:$0xff] %v424_v14  ;;  %v440_v22 = vld [vmem:[%s2253_s9 + $0xe0] sm:$0xff]  ;;  %v442_v23 = vld [vmem:[%s2253_s9 + $0xe8] sm:$0xff] }
  0x28   : > { %427 = vst [vmem:[%s350_s11 + $0x38] sm:$0xff] %v426_v15 }
  0x29   : > { %429 = vst [vmem:[%s350_s11 + $0x40] sm:$0xff] %v428_v16 }
  0x2a   : > { %431 = vst [vmem:[%s350_s11 + $0x48] sm:$0xff] %v430_v17 }
  0x2b   : > { %433 = vst [vmem:[%s350_s11 + $0x50] sm:$0xff] %v432_v18 }
  0x2c   : > { %435 = vst [vmem:[%s350_s11 + $0x58] sm:$0xff] %v434_v19 }
  0x2d   : > { %437 = vst [vmem:[%s350_s11 + $0x60] sm:$0xff] %v436_v20 }
  0x2e   : > { %439 = vst [vmem:[%s350_s11 + $0x68] sm:$0xff] %v438_v21 }
  0x2f   : > { %441 = vst [vmem:[%s350_s11 + $0x70] sm:$0xff] %v440_v22 }
  0x30   : > { %443 = vst [vmem:[%s350_s11 + $0x78] sm:$0xff] %v442_v23 }
  0x31 PF: > { %p1790_p10 = scmp.ge.s32.totalorder %s2139_s27, 1  ;;  %p448_p11 = scmp.lt.s32.totalorder %s2139_s27, 3 }
  0x33   : > { %p449_p12 = pnand %p1790_p10, %p448_p11 }
  0x34   : > { %s2277_s16 = sand.u32 (!%p449_p12), 1, %s2131_s25   ;;  %s2142_s8 = smov (!%p449_p12), 64  }
  0x35   : > { %452 = sbr.rel (%p449_p12) target bundleno = 5191 (0x1447), region = 119  ;;  %s1791_s19 = sshll.u32 (!%p449_p12), %s2277_s16, 6 }
  0x36   : > { %s2287_s20 = scalar_lea.vmem (!%p449_p12), [#allocation3], %s1791_s19  ;;  %s1792_s9 = sshll.u32 (!%p449_p12), %s2277_s16, 7 }
  0x37   : > { %s2326_s11 = scalar_lea.vmem (!%p449_p12), [#allocation4], %s1792_s9  ;;  %s2143_s14 = smov (!%p449_p12), 32  }
  0x38   : > { %s1793_s22 = sshll.u32 (!%p449_p12), %s2277_s16, 4  ;;  %s1680_s19 = scalar_lea.sflag (!%p449_p12), [#allocation6], %s2277_s16 }
  0x39   : > { %s496_s17 = scalar_lea.vmem (!%p449_p12), [#allocation5], %s1793_s22  ;;  %s2097_s22 = scalar_lea.hbm (!%p449_p12), %s2780_s7, 32 }
  0x3a   : > { %v1923_v24 = vld [vmem:[%s2775_s2] sm:$0xff]  ;;  %v2282_v25 = vld [vmem:[%s2776_s3 + $0x8] sm:$0xff]  ;;  %v2141_v26 = vmov 0   ;;  %vm569_vm0 = vcmask 130048   ;;  %v1921_v23 = vld [vmem:[%s2287_s20 + $0x30] sm:$0xff]  ;;  %vm677_vm13 = vcmask 261120  }
  0x3b   : > { %1975 = vset.pattern.permute.xlu0 %v2141_v26  ;;  %1976 = vset.pattern.permute.xlu1 %v2141_v26  ;;  %v1920_v27 = vld [vmem:[%s2287_s20 + $0x28] sm:$0xff]  ;;  %v1915_v28 = vld [vmem:[%s2287_s20] sm:$0xff] }
  0x3c   : > { %1929 = vmatpush.bf16.msra.mxu1 %v1923_v24  ;;  %601 = vmatpush.bf16.msra.mxu0 %v1923_v24  ;;  %v2295_v29 = vld [vmem:[%s2776_s3] sm:$0xff]  ;;  %v774_v13 = vld [vmem:[%s2326_s11 + $0x8] sm:$0xff] }
  0x3d   : > { %1930 = vmatpush.bf16.msra.mxu2 %v1923_v24  ;;  %1977 = vset.pattern.permute.xlu2 %v2141_v26  ;;  %v2319_v33 = vld [vmem:[%s2777_s4] ss:$0 sm:$0xff]  ;;  %vm776_vm10 = vcmp.gt.f32.partialorder %v774_v13, 0.0  ;;  %v1916_v24 = vld [vmem:[%s2287_s20 + $0x8] sm:$0xff] }
  0x3e   : > { %928 = vmatpush.bf16.msra.mxu3 %v2282_v25  ;;  %v773_v7 = vld [vmem:[%s2326_s11] sm:$0xff]  ;;  %v778_v14 = vsel %vm776_vm10, 1, %v2141_v26 }
  0x3f   : > { %1835 = vmatmul.msk.bf16.vlgmr.msra.gmra.mxu1 %vm569_vm0, %v1920_v27  ;;  %1830 = vmatmul.msk.bf16.vlgmr.msra.gmra.mxu0 %vm569_vm0, %v1915_v28  ;;  %vm775_vm9 = vcmp.gt.f32.partialorder %v773_v7, 0.0  ;;  %v1922_v27 = vld [vmem:[%s2287_s20 + $0x38] sm:$0xff] }
  0x40   : > { %687 = vmatpush.bf16.msrb.mxu1 %v2282_v25  ;;  %v777_v8 = vsel %vm775_vm9, 1, %v2141_v26  ;;  %1836 = vmatmul.msk.bf16.vlgmr.msra.gmra.mxu2 %vm569_vm0, %v1921_v23 }
  0x41   : > { %807 = vmatpush.bf16.msrb.mxu2 %v2282_v25 }
  0x42   : > { %929 = vmatpush.bf16.msra.mxu3 %v2295_v29 }
  0x44   : > { %688 = vmatpush.bf16.msrb.mxu1 %v2295_v29 }
  0x45   : > { %808 = vmatpush.bf16.msrb.mxu2 %v2295_v29 }
  0x46   : > { %1291 = vmatpush.bf16.msrb.mxu3 %v2282_v25 }
  0x48   : > { %1049 = vmatpush.bf16.msra.mxu1 %v2282_v25 }
  0x49   : > { %1170 = vmatpush.bf16.msra.mxu2 %v2282_v25 }
  0x4a   : > { %1292 = vmatpush.bf16.msrb.mxu3 %v2295_v29 }
  0x4c   : > { %1050 = vmatpush.bf16.msra.mxu1 %v2295_v29 }
  0x4d   : > { %1171 = vmatpush.bf16.msra.mxu2 %v2295_v29 }
  0x4f   : > { %689 = vmatmul.bf16.vlgmr.msrb.gmra.mxu1 %v2141_v26  ;;  %1831 = vmatmul.msk.bf16.gmra.mxu0 %vm569_vm0, %v1916_v24 }
  0x50   : > { %1412 = vmatpush.bf16.msrb.mxu1 %v2282_v25  ;;  %1837 = vmatmul.msk.bf16.gmra.mxu2 %vm569_vm0, %v1922_v27 }
  0x54   : > { %1413 = vmatpush.bf16.msrb.mxu1 %v2295_v29 }
  0xbc   : > { %v2312_v30 = vpop.f32.mrf.mxu1  ;;  %v603_v32 = vpop.f32.mrf.mxu0 }
  0xbd   : > { %v604_v34 = vadd.f32 %v2319_v33, %v603_v32 }
  0xc4   : > { %v2314_v31 = vpop.f32.mrf.mxu1  ;;  %v605_v38 = vpop.f32.mrf.mxu0 }
  0xc5   : > { %v606_v39 = vadd.f32 %v2319_v33, %v605_v38 }
  0xcc   : > { %v690_v35 = vpop.f32.mrf.mxu1 }
  0xcd   : > { %v695_v36 = vadd.f32 %v690_v35, %v604_v34 }
  0xcf   : > { %v1846_v37 = vmul.f32 -1.442695, %v695_v36 }
  0xd1   : > { %1980 = vpow2.f32 %v1846_v37 }
  0xd4   : > { %v692_v40 = vpop.f32.mrf.mxu1 }
  0xd5   : > { %v696_v41 = vadd.f32 %v692_v40, %v606_v39 }
  0xd7   : > { %v1981_v42 = vpop.eup %1980  ;;  %v1847_v43 = vmul.f32 -1.442695, %v696_v41 }
  0xd8   : > { %v703_v44 = vadd.f32 1.0, %v1981_v42  ;;  %v2370_v42 = vpop.f32.mrf.mxu2 }
  0xd9   : > { %1982 = vpow2.f32 %v1847_v43 }
  0xda   : > { %1984 = vrcp.f32 %v703_v44  ;;  %v716_v50 = vand.u32 2147483648, %v703_v44  ;;  %v714_v52 = vand.u32 2147483647, %v703_v44  ;;  %vm710_vm2 = vweird.f32 %v703_v44 }
  0xdc   : > { %v717_v55 = vor.u32 1.1754944e-38, %v716_v50  ;;  %vm715_vm4 = vcmp.eq.f32.partialorder %v714_v52, 8.507059e+37 }
  0xdf   : > { %v1983_v45 = vpop.eup %1982 }
  0xe0   : > { %v1985_v46 = vpop.eup %1984  ;;  %v704_v47 = vadd.f32 1.0, %v1983_v45  ;;  %v2372_v43 = vpop.f32.mrf.mxu2 }
  0xe1   : > { %v706_v48 = vmul.f32 %v1985_v46, %v703_v44  ;;  %vm711_vm1 = vweird.f32 %v1985_v46 }
  0xe2   : > { %1986 = vrcp.f32 %v704_v47  ;;  %vm712_vm3 = vmor %vm710_vm2, %vm711_vm1  ;;  %v731_v61 = vand.u32 2147483648, %v704_v47  ;;  %v729_v0 = vand.u32 2147483647, %v704_v47  ;;  %vm725_vm6 = vweird.f32 %v704_v47 }
  0xe3   : > { %v707_v49 = vsub.f32 1.0, %v706_v48 }
  0xe4   : > { %v732_v2 = vor.u32 1.1754944e-38, %v731_v61  ;;  %vm730_vm8 = vcmp.eq.f32.partialorder %v729_v0, 8.507059e+37 }
  0xe5   : > { %v708_v51 = vmul.f32 %v1985_v46, %v707_v49 }
  0xe7   : > { %v709_v53 = vadd.f32 %v1985_v46, %v708_v51 }
  0xe8   : > { %v1987_v54 = vpop.eup %1986  ;;  %v2374_v44 = vpop.f32.mrf.mxu2 }
  0xe9   : > { %v721_v56 = vmul.f32 %v1987_v54, %v704_v47  ;;  %v713_v57 = vsel %vm712_vm3, %v1985_v46, %v709_v53  ;;  %vm726_vm5 = vweird.f32 %v1987_v54  ;;  %v608_v46 = vpop.f32.mrf.mxu0 }
  0xea   : > { %v718_v58 = vsel %vm715_vm4, %v717_v55, %v713_v57  ;;  %vm727_vm7 = vmor %vm725_vm6, %vm726_vm5  ;;  %v609_v47 = vadd.f32 %v2319_v33, %v608_v46 }
  0xeb   : > { %v722_v59 = vsub.f32 1.0, %v721_v56  ;;  %v735_v60 = vmul.f32 2.0, %v718_v58  ;;  %v739_v15 = vmul.f32 0.0, %v718_v58 }
  0xed   : > { %v1848_v62 = vadd.f32 -1.0, %v735_v60  ;;  %v723_v63 = vmul.f32 %v1987_v54, %v722_v59 }
  0xef   : > { %743 = vrot.lane.b32.xlu0 %v1848_v62, %s2142_s8  ;;  %v724_v1 = vadd.f32 %v1987_v54, %v723_v63 }
  0xf0   : > { %v2376_v45 = vpop.f32.mrf.mxu2 }
  0xf1   : > { %v728_v3 = vsel %vm727_vm7, %v1987_v54, %v724_v1  ;;  %v610_v51 = vpop.f32.mrf.mxu0 }
  0xf2   : > { %v733_v4 = vsel %vm730_vm8, %v732_v2, %v728_v3 }
  0xf3   : > { %v736_v5 = vmul.f32 2.0, %v733_v4  ;;  %v740_v18 = vmul.f32 0.0, %v733_v4 }
  0xf5   : > { %v1849_v6 = vadd.f32 -1.0, %v736_v5 }
  0xf7   : > { %745 = vrot.lane.b32.xlu0 %v1849_v6, %s2142_s8 }
  0xff   : > { %780 = vperm.xlu0 %1975, %v777_v8  }
 0x161   : > { %v744_v9 = vpop.permute.xlu0 %743 }
 0x162   : > { %v749_v10 = vmul.f32 %v744_v9, %v718_v58 }
 0x164   : > { %753 = vrot.lane.b32.xlu1 %v749_v10, %s2143_s14 }
 0x169   : > { %v746_v11 = vpop.permute.xlu0 %745 }
 0x16a   : > { %v750_v12 = vmul.f32 %v746_v11, %v733_v4 }
 0x16c   : > { %755 = vrot.lane.b32.xlu1 %v750_v12, %s2143_s14 }
 0x171   : > { %v2350_v32 = vpop.permute.xlu0 %780 }
 0x172   : > { %vm785_vm11 = vcmp.eq.s32.totalorder %v2350_v32, 1 }
 0x174   : > { %783 = vperm.xlu1 %1976, %v778_v14  }
 0x1d6   : > { %v754_v16 = vpop.permute.xlu1 %753 }
 0x1d7   : > { %v2334_v17 = vadd.f32 %v754_v16, %v739_v15 }
 0x1d9   : > { %1988 = vtanh.f32 %v2334_v17 }
 0x1de   : > { %v756_v19 = vpop.permute.xlu1 %755 }
 0x1df   : > { %v1989_v20 = vpop.eup %1988  ;;  %v2337_v21 = vadd.f32 %v756_v19, %v740_v18 }
 0x1e0   : > { %765 = vrot.lane.b32.xlu2 %v1989_v20, %s2142_s8 }
 0x1e1   : > { %1990 = vtanh.f32 %v2337_v21 }
 0x1e6   : > { %v2352_v34 = vpop.permute.xlu1 %783 }
 0x1e7   : > { %v1991_v22 = vpop.eup %1990  ;;  %vm786_vm12 = vcmp.eq.s32.totalorder %v2352_v34, 1 }
 0x1e8   : > { %767 = vrot.lane.b32.xlu2 %v1991_v22, %s2142_s8  ;;  %v1855_v22 = vld [vmem:[%s2326_s11 + $0x10] sm:$0xff] }
 0x1e9   : > { %vm896_vm7 = vcmp.gt.f32.partialorder %v1855_v22, 0.0 }
 0x1ea   : > { %v898_v23 = vsel %vm896_vm7, 1, %v2141_v26 }
 0x23a   : > { %v766_v28 = vpop.permute.xlu2 %765 }
 0x23b   : > { %v771_v35 = vmul.f32 %v766_v28, %v718_v58  ;;  %v2389_v28 = vsel %vm786_vm12, %v2337_v21, 0.0 }
 0x23d   : > { %v2358_v38 = vsel %vm785_vm11, %v771_v35, 0.0 }
 0x242   : > { %v768_v36 = vpop.permute.xlu2 %767 }
 0x243   : > { %v772_v37 = vmul.f32 %v768_v36, %v733_v4 }
 0x245   : > { %v2362_v39 = vsel %vm786_vm12, %v772_v37, 0.0 }
 0x246   : > { %v794_v40 = vpack.c.bf16 %v2362_v39, %v2358_v38 }
 0x248   : > { %796 = vrot.lane.b32.xlu2 %v794_v40, %s2143_s14 }
 0x2a2   : > { %v797_v41 = vpop.permute.xlu2 %796 }
 0x2a3   : > { %1850 = vmatmul.msk.bf16.vlgmr.msrb.gmra.mxu2 %vm677_vm13, %v797_v41  ;;  %v2399_v41 = vsel %vm785_vm11, %v2334_v17, 0.0 }
 0x2a4   : > { %1533 = vmatpush.bf16.msrb.mxu2 %v2282_v25  ;;  %v611_v25 = vadd.f32 %v2319_v33, %v610_v51 }
 0x2a8   : > { %1534 = vmatpush.bf16.msrb.mxu2 %v2295_v29 }
 0x326   : > { %v810_v48 = vpop.f32.mrf.mxu2 }
 0x327   : > { %v815_v49 = vadd.f32 %v810_v48, %v609_v47  ;;  %v1856_v48 = vld [vmem:[%s2326_s11 + $0x18] sm:$0xff] }
 0x328   : > { %vm897_vm8 = vcmp.gt.f32.partialorder %v1856_v48, 0.0 }
 0x329   : > { %v1851_v50 = vmul.f32 -1.442695, %v815_v49  ;;  %v899_v49 = vsel %vm897_vm8, 1, %v2141_v26 }
 0x32b   : > { %1992 = vpow2.f32 %v1851_v50  ;;  %v1917_v50 = vld [vmem:[%s2287_s20 + $0x10] sm:$0xff] }
 0x32c   : > { %1832 = vmatmul.msk.bf16.gmra.mxu0 %vm569_vm0, %v1917_v50 }
 0x32e   : > { %v812_v52 = vpop.f32.mrf.mxu2 }
 0x32f   : > { %v816_v29 = vadd.f32 %v812_v52, %v611_v25 }
 0x331   : > { %v1993_v53 = vpop.eup %1992  ;;  %v1852_v54 = vmul.f32 -1.442695, %v816_v29 }
 0x332   : > { %v823_v55 = vadd.f32 1.0, %v1993_v53 }
 0x333   : > { %1994 = vpow2.f32 %v1852_v54 }
 0x334   : > { %1996 = vrcp.f32 %v823_v55  ;;  %v836_v61 = vand.u32 2147483648, %v823_v55  ;;  %v834_v63 = vand.u32 2147483647, %v823_v55  ;;  %vm830_vm15 = vweird.f32 %v823_v55 }
 0x336   : > { %v837_v2 = vor.u32 1.1754944e-38, %v836_v61  ;;  %vm835_vm2 = vcmp.eq.f32.partialorder %v834_v63, 8.507059e+37 }
 0x339   : > { %v1995_v56 = vpop.eup %1994 }
 0x33a   : > { %v1997_v57 = vpop.eup %1996  ;;  %v824_v58 = vadd.f32 1.0, %v1995_v56 }
 0x33b   : > { %v826_v59 = vmul.f32 %v1997_v57, %v823_v55  ;;  %vm831_vm14 = vweird.f32 %v1997_v57 }
 0x33c   : > { %1998 = vrcp.f32 %v824_v58  ;;  %vm832_vm1 = vmor %vm830_vm15, %vm831_vm14  ;;  %v851_v8 = vand.u32 2147483648, %v824_v58  ;;  %v849_v11 = vand.u32 2147483647, %v824_v58  ;;  %vm845_vm4 = vweird.f32 %v824_v58 }
 0x33d   : > { %v827_v60 = vsub.f32 1.0, %v826_v59 }
 0x33e   : > { %v852_v13 = vor.u32 1.1754944e-38, %v851_v8  ;;  %vm850_vm6 = vcmp.eq.f32.partialorder %v849_v11, 8.507059e+37 }
 0x33f   : > { %v828_v62 = vmul.f32 %v1997_v57, %v827_v60 }
 0x341   : > { %v829_v0 = vadd.f32 %v1997_v57, %v828_v62 }
 0x342   : > { %v1999_v1 = vpop.eup %1998 }
 0x343   : > { %v841_v3 = vmul.f32 %v1999_v1, %v824_v58  ;;  %v833_v4 = vsel %vm832_vm1, %v1997_v57, %v829_v0  ;;  %vm846_vm3 = vweird.f32 %v1999_v1 }
 0x344   : > { %v838_v5 = vsel %vm835_vm2, %v837_v2, %v833_v4  ;;  %vm847_vm5 = vmor %vm845_vm4, %vm846_vm3 }
 0x345   : > { %v842_v6 = vsub.f32 1.0, %v841_v3  ;;  %v855_v7 = vmul.f32 2.0, %v838_v5  ;;  %v859_v34 = vmul.f32 %v838_v5, %v2399_v41 }
 0x347   : > { %v1853_v9 = vadd.f32 -1.0, %v855_v7  ;;  %v843_v10 = vmul.f32 %v1999_v1, %v842_v6 }
 0x349   : > { %863 = vrot.lane.b32.xlu1 %v1853_v9, %s2142_s8  ;;  %v844_v12 = vadd.f32 %v1999_v1, %v843_v10 }
 0x34b   : > { %v848_v14 = vsel %vm847_vm5, %v1999_v1, %v844_v12 }
 0x34c   : > { %v853_v15 = vsel %vm850_vm6, %v852_v13, %v848_v14 }
 0x34d   : > { %v856_v16 = vmul.f32 2.0, %v853_v15  ;;  %v860_v35 = vmul.f32 %v853_v15, %v2389_v28 }
 0x34f   : > { %v1854_v18 = vadd.f32 -1.0, %v856_v16 }
 0x351   : > { %865 = vrot.lane.b32.xlu2 %v1854_v18, %s2142_s8 }
 0x3a9   : > { %v613_v57 = vpop.f32.mrf.mxu0 }
 0x3aa   : > { %v614_v58 = vadd.f32 %v2319_v33, %v613_v57 }
 0x3ab   : > { %v866_v19 = vpop.permute.xlu2 %865 }
 0x3ac   : > { %v870_v20 = vmul.f32 %v866_v19, %v853_v15 }
 0x3ae   : > { %875 = vrot.lane.b32.xlu1 %v870_v20, %s2143_s14 }
 0x3b1   : > { %v615_v61 = vpop.f32.mrf.mxu0 }
 0x3b2   : > { %v616_v62 = vadd.f32 %v2319_v33, %v615_v61  ;;  %v1918_v61 = vld [vmem:[%s2287_s20 + $0x18] sm:$0xff] }
 0x3b3   : > { %1833 = vmatmul.msk.bf16.gmra.mxu0 %vm569_vm0, %v1918_v61 }
 0x3b6   : > { %901 = vperm.xlu1 %1976, %v898_v23  }
 0x3bb   : > { %v864_v24 = vpop.permute.xlu1 %863 }
 0x3bc   : > { %v869_v27 = vmul.f32 %v864_v24, %v838_v5 }
 0x3be   : > { %873 = vrot.lane.b32.xlu0 %v869_v27, %s2143_s14 }
 0x420   : > { %v876_v36 = vpop.permute.xlu1 %875 }
 0x421   : > { %v2392_v37 = vadd.f32 %v876_v36, %v860_v35 }
 0x423   : > { %2000 = vtanh.f32 %v2392_v37 }
 0x428   : > { %v2410_v32 = vpop.permute.xlu1 %901 }
 0x429   : > { %v2001_v40 = vpop.eup %2000  ;;  %vm906_vm10 = vcmp.eq.s32.totalorder %v2410_v32, 1 }
 0x42a   : > { %887 = vrot.lane.b32.xlu0 %v2001_v40, %s2142_s8 }
 0x430   : > { %v874_v21 = vpop.permute.xlu0 %873 }
 0x431   : > { %v2402_v46 = vadd.f32 %v874_v21, %v859_v34 }
 0x433   : > { %2002 = vtanh.f32 %v2402_v46 }
 0x439   : > { %v2003_v47 = vpop.eup %2002 }
 0x43a   : > { %885 = vrot.lane.b32.xlu2 %v2003_v47, %s2142_s8 }
 0x442   : > { %904 = vperm.xlu2 %1977, %v899_v49   ;;  %v1862_v49 = vld [vmem:[%s2326_s11 + $0x20] sm:$0xff] }
 0x443   : > { %vm1017_vm5 = vcmp.gt.f32.partialorder %v1862_v49, 0.0 }
 0x444   : > { %v1019_v50 = vsel %vm1017_vm5, 1, %v2141_v26 }
 0x494   : > { %v886_v17 = vpop.permute.xlu2 %885 }
 0x495   : > { %v891_v51 = vmul.f32 %v886_v17, %v838_v5 }
 0x497   : > { %v2419_v53 = vsel %vm906_vm10, %v891_v51, %v2358_v38 }
 0x49c   : > { %v888_v25 = vpop.permute.xlu0 %887  ;;  %v2412_v52 = vpop.permute.xlu2 %904 }
 0x49d   : > { %v892_v29 = vmul.f32 %v888_v25, %v853_v15  ;;  %vm907_vm9 = vcmp.eq.s32.totalorder %v2412_v52, 1 }
 0x49e   : > { %v2442_v25 = vsel %vm907_vm9, %v2392_v37, %v2389_v28 }
 0x49f   : > { %v2424_v54 = vsel %vm907_vm9, %v892_v29, %v2362_v39 }
 0x4a0   : > { %v915_v55 = vpack.c.bf16 %v2424_v54, %v2419_v53 }
 0x4a2   : > { %917 = vrot.lane.b32.xlu0 %v915_v55, %s2143_s14 }
 0x514   : > { %v918_v56 = vpop.permute.xlu0 %917 }
 0x515   : > { %1857 = vmatmul.msk.bf16.vlgmr.msra.gmra.mxu3 %vm677_vm13, %v918_v56 }
 0x598   : > { %v931_v59 = vpop.f32.mrf.mxu3 }
 0x599   : > { %v936_v60 = vadd.f32 %v931_v59, %v614_v58  ;;  %v2453_v58 = vsel %vm906_vm10, %v2402_v46, %v2399_v41 }
 0x59b   : > { %v1858_v38 = vmul.f32 -1.442695, %v936_v60  ;;  %v1863_v60 = vld [vmem:[%s2326_s11 + $0x28] sm:$0xff] }
 0x59c   : > { %vm1018_vm6 = vcmp.gt.f32.partialorder %v1863_v60, 0.0 }
 0x59d   : > { %2004 = vpow2.f32 %v1858_v38  ;;  %v1020_v38 = vsel %vm1018_vm6, 1, %v2141_v26 }
 0x5a0   : > { %v933_v39 = vpop.f32.mrf.mxu3 }
 0x5a1   : > { %v937_v63 = vadd.f32 %v933_v39, %v616_v62 }
 0x5a3   : > { %v2005_v0 = vpop.eup %2004  ;;  %v1859_v1 = vmul.f32 -1.442695, %v937_v63 }
 0x5a4   : > { %v944_v2 = vadd.f32 1.0, %v2005_v0 }
 0x5a5   : > { %2006 = vpow2.f32 %v1859_v1 }
 0x5a6   : > { %2008 = vrcp.f32 %v944_v2  ;;  %v957_v8 = vand.u32 2147483648, %v944_v2  ;;  %v955_v10 = vand.u32 2147483647, %v944_v2  ;;  %vm951_vm12 = vweird.f32 %v944_v2 }
 0x5a8   : > { %v958_v13 = vor.u32 1.1754944e-38, %v957_v8  ;;  %vm956_vm15 = vcmp.eq.f32.partialorder %v955_v10, 8.507059e+37 }
 0x5ab   : > { %v2007_v3 = vpop.eup %2006 }
 0x5ac   : > { %v2009_v4 = vpop.eup %2008  ;;  %v945_v5 = vadd.f32 1.0, %v2007_v3 }
 0x5ad   : > { %v947_v6 = vmul.f32 %v2009_v4, %v944_v2  ;;  %vm952_vm11 = vweird.f32 %v2009_v4 }
 0x5ae   : > { %2010 = vrcp.f32 %v945_v5  ;;  %vm953_vm14 = vmor %vm951_vm12, %vm952_vm11  ;;  %v972_v20 = vand.u32 2147483648, %v945_v5  ;;  %v970_v24 = vand.u32 2147483647, %v945_v5  ;;  %vm966_vm2 = vweird.f32 %v945_v5 }
 0x5af   : > { %v948_v7 = vsub.f32 1.0, %v947_v6 }
 0x5b0   : > { %v973_v35 = vor.u32 1.1754944e-38, %v972_v20  ;;  %vm971_vm4 = vcmp.eq.f32.partialorder %v970_v24, 8.507059e+37 }
 0x5b1   : > { %v949_v9 = vmul.f32 %v2009_v4, %v948_v7 }
 0x5b3   : > { %v950_v11 = vadd.f32 %v2009_v4, %v949_v9 }
 0x5b4   : > { %v2011_v12 = vpop.eup %2010 }
 0x5b5   : > { %v962_v14 = vmul.f32 %v2011_v12, %v945_v5  ;;  %v954_v15 = vsel %vm953_vm14, %v2009_v4, %v950_v11  ;;  %vm967_vm1 = vweird.f32 %v2011_v12  ;;  %v618_v4 = vpop.f32.mrf.mxu0 }
 0x5b6   : > { %v959_v16 = vsel %vm956_vm15, %v958_v13, %v954_v15  ;;  %vm968_vm3 = vmor %vm966_vm2, %vm967_vm1  ;;  %v619_v5 = vadd.f32 %v2319_v33, %v618_v4 }
 0x5b7   : > { %v963_v18 = vsub.f32 1.0, %v962_v14  ;;  %v976_v19 = vmul.f32 2.0, %v959_v16  ;;  %v980_v28 = vmul.f32 %v959_v16, %v2453_v58 }
 0x5b9   : > { %v1860_v22 = vadd.f32 -1.0, %v976_v19  ;;  %v964_v23 = vmul.f32 %v2011_v12, %v963_v18 }
 0x5bb   : > { %984 = vrot.lane.b32.xlu1 %v1860_v22, %s2142_s8  ;;  %v965_v27 = vadd.f32 %v2011_v12, %v964_v23 }
 0x5bd   : > { %v969_v36 = vsel %vm968_vm3, %v2011_v12, %v965_v27  ;;  %v620_v8 = vpop.f32.mrf.mxu0 }
 0x5be   : > { %v974_v40 = vsel %vm971_vm4, %v973_v35, %v969_v36  ;;  %v621_v9 = vadd.f32 %v2319_v33, %v620_v8  ;;  %v1919_v8 = vld [vmem:[%s2287_s20 + $0x20] sm:$0xff] }
 0x5bf   : > { %v977_v34 = vmul.f32 2.0, %v974_v40  ;;  %v981_v29 = vmul.f32 %v974_v40, %v2442_v25  ;;  %1834 = vmatmul.msk.bf16.gmra.mxu0 %vm569_vm0, %v1919_v8 }
 0x5c1   : > { %v1861_v21 = vadd.f32 -1.0, %v977_v34 }
 0x5c3   : > { %986 = vrot.lane.b32.xlu2 %v1861_v21, %s2142_s8 }
 0x61d   : > { %v987_v47 = vpop.permute.xlu2 %986 }
 0x61e   : > { %v991_v48 = vmul.f32 %v987_v47, %v974_v40 }
 0x620   : > { %996 = vrot.lane.b32.xlu1 %v991_v48, %s2143_s14 }
 0x628   : > { %1022 = vperm.xlu1 %1976, %v1019_v50  }
 0x62d   : > { %v985_v17 = vpop.permute.xlu1 %984 }
 0x62e   : > { %v990_v51 = vmul.f32 %v985_v17, %v959_v16 }
 0x630   : > { %994 = vrot.lane.b32.xlu0 %v990_v51, %s2143_s14 }
 0x692   : > { %v997_v55 = vpop.permute.xlu1 %996 }
 0x693   : > { %v2445_v56 = vadd.f32 %v997_v55, %v981_v29 }
 0x695   : > { %2012 = vtanh.f32 %v2445_v56 }
 0x69a   : > { %v2464_v46 = vpop.permute.xlu1 %1022 }
 0x69b   : > { %v2013_v57 = vpop.eup %2012  ;;  %vm1027_vm8 = vcmp.eq.s32.totalorder %v2464_v46, 1 }
 0x69c   : > { %1008 = vrot.lane.b32.xlu0 %v2013_v57, %s2142_s8 }
 0x6a2   : > { %v995_v37 = vpop.permute.xlu0 %994 }
 0x6a3   : > { %v2456_v52 = vadd.f32 %v995_v37, %v980_v28 }
 0x6a5   : > { %2014 = vtanh.f32 %v2456_v52 }
 0x6ab   : > { %v2015_v59 = vpop.eup %2014 }
 0x6ac   : > { %1006 = vrot.lane.b32.xlu2 %v2015_v59, %s2142_s8 }
 0x6b4   : > { %1025 = vperm.xlu2 %1977, %v1020_v38   ;;  %v1869_v38 = vld [vmem:[%s2326_s11 + $0x30] sm:$0xff] }
 0x6b5   : > { %vm1138_vm3 = vcmp.gt.f32.partialorder %v1869_v38, 0.0 }
 0x6b6   : > { %v1140_v61 = vsel %vm1138_vm3, 1, %v2141_v26 }
 0x706   : > { %v1007_v41 = vpop.permute.xlu2 %1006 }
 0x707   : > { %v1012_v32 = vmul.f32 %v1007_v41, %v959_v16 }
 0x709   : > { %v2473_v0 = vsel %vm1027_vm8, %v1012_v32, %v2419_v53 }
 0x70e   : > { %v1009_v62 = vpop.permute.xlu0 %1008  ;;  %v2466_v39 = vpop.permute.xlu2 %1025 }
 0x70f   : > { %v1013_v63 = vmul.f32 %v1009_v62, %v974_v40  ;;  %vm1028_vm7 = vcmp.eq.s32.totalorder %v2466_v39, 1 }
 0x710   : > { %v2496_v62 = vsel %vm1028_vm7, %v2445_v56, %v2442_v25 }
 0x711   : > { %v2478_v1 = vsel %vm1028_vm7, %v1013_v63, %v2424_v54 }
 0x712   : > { %v1036_v2 = vpack.c.bf16 %v2478_v1, %v2473_v0 }
 0x714   : > { %1038 = vrot.lane.b32.xlu0 %v1036_v2, %s2143_s14 }
 0x786   : > { %v1039_v3 = vpop.permute.xlu0 %1038 }
 0x787   : > { %1864 = vmatmul.msk.bf16.vlgmr.msra.gmra.mxu1 %vm677_vm13, %v1039_v3 }
 0x804   : > { %v1052_v6 = vpop.f32.mrf.mxu1 }
 0x805   : > { %v1057_v7 = vadd.f32 %v1052_v6, %v619_v5  ;;  %v2507_v5 = vsel %vm1027_vm8, %v2456_v52, %v2453_v58 }
 0x807   : > { %v1865_v53 = vmul.f32 -1.442695, %v1057_v7  ;;  %v1870_v7 = vld [vmem:[%s2326_s11 + $0x38] sm:$0xff] }
 0x808   : > { %vm1139_vm4 = vcmp.gt.f32.partialorder %v1870_v7, 0.0 }
 0x809   : > { %2016 = vpow2.f32 %v1865_v53  ;;  %v1141_v53 = vsel %vm1139_vm4, 1, %v2141_v26 }
 0x80c   : > { %v1054_v54 = vpop.f32.mrf.mxu1 }
 0x80d   : > { %v1058_v10 = vadd.f32 %v1054_v54, %v621_v9 }
 0x80f   : > { %v2017_v11 = vpop.eup %2016  ;;  %v1866_v12 = vmul.f32 -1.442695, %v1058_v10 }
 0x810   : > { %v1065_v13 = vadd.f32 1.0, %v2017_v11 }
 0x811   : > { %2018 = vpow2.f32 %v1866_v12 }
 0x812   : > { %2020 = vrcp.f32 %v1065_v13  ;;  %v1078_v20 = vand.u32 2147483648, %v1065_v13  ;;  %v1076_v23 = vand.u32 2147483647, %v1065_v13  ;;  %vm1072_vm10 = vweird.f32 %v1065_v13 }
 0x814   : > { %v1079_v35 = vor.u32 1.1754944e-38, %v1078_v20  ;;  %vm1077_vm12 = vcmp.eq.f32.partialorder %v1076_v23, 8.507059e+37 }
 0x817   : > { %v2019_v14 = vpop.eup %2018 }
 0x818   : > { %v2021_v15 = vpop.eup %2020  ;;  %v1066_v16 = vadd.f32 1.0, %v2019_v14 }
 0x819   : > { %v1068_v18 = vmul.f32 %v2021_v15, %v1065_v13  ;;  %vm1073_vm9 = vweird.f32 %v2021_v15 }
 0x81a   : > { %2022 = vrcp.f32 %v1066_v16  ;;  %vm1074_vm11 = vmor %vm1072_vm10, %vm1073_vm9  ;;  %v1093_v48 = vand.u32 2147483648, %v1066_v16  ;;  %v1091_v17 = vand.u32 2147483647, %v1066_v16  ;;  %vm1087_vm15 = vweird.f32 %v1066_v16 }
 0x81b   : > { %v1069_v19 = vsub.f32 1.0, %v1068_v18 }
 0x81c   : > { %v1094_v29 = vor.u32 1.1754944e-38, %v1093_v48  ;;  %vm1092_vm2 = vcmp.eq.f32.partialorder %v1091_v17, 8.507059e+37 }
 0x81d   : > { %v1070_v22 = vmul.f32 %v2021_v15, %v1069_v19 }
 0x81f   : > { %v1071_v24 = vadd.f32 %v2021_v15, %v1070_v22 }
 0x820   : > { %v2023_v27 = vpop.eup %2022 }
 0x821   : > { %v1083_v36 = vmul.f32 %v2023_v27, %v1066_v16  ;;  %v1075_v40 = vsel %vm1074_vm11, %v2021_v15, %v1071_v24  ;;  %vm1088_vm14 = vweird.f32 %v2023_v27  ;;  %v623_v15 = vpop.f32.mrf.mxu0 }
 0x822   : > { %v1080_v34 = vsel %vm1077_vm12, %v1079_v35, %v1075_v40  ;;  %vm1089_vm1 = vmor %vm1087_vm15, %vm1088_vm14  ;;  %v624_v16 = vadd.f32 %v2319_v33, %v623_v15 }
 0x823   : > { %v1084_v21 = vsub.f32 1.0, %v1083_v36  ;;  %v1097_v47 = vmul.f32 2.0, %v1080_v34  ;;  %v1101_v25 = vmul.f32 %v1080_v34, %v2507_v5 }
 0x825   : > { %v1867_v49 = vadd.f32 -1.0, %v1097_v47  ;;  %v1085_v50 = vmul.f32 %v2023_v27, %v1084_v21 }
 0x827   : > { %1105 = vrot.lane.b32.xlu1 %v1867_v49, %s2142_s8  ;;  %v1086_v51 = vadd.f32 %v2023_v27, %v1085_v50 }
 0x829   : > { %v1090_v55 = vsel %vm1089_vm1, %v2023_v27, %v1086_v51  ;;  %v625_v20 = vpop.f32.mrf.mxu0 }
 0x82a   : > { %v1095_v57 = vsel %vm1092_vm2, %v1094_v29, %v1090_v55  ;;  %v626_v22 = vadd.f32 %v2319_v33, %v625_v20 }
 0x82b   : > { %v1098_v28 = vmul.f32 2.0, %v1095_v57  ;;  %v1102_v63 = vmul.f32 %v1095_v57, %v2496_v62 }
 0x82d   : > { %v1868_v37 = vadd.f32 -1.0, %v1098_v28 }
 0x82f   : > { %1107 = vrot.lane.b32.xlu2 %v1868_v37, %s2142_s8 }
 0x889   : > { %v1108_v59 = vpop.permute.xlu2 %1107 }
 0x88a   : > { %v1112_v60 = vmul.f32 %v1108_v59, %v1095_v57 }
 0x88c   : > { %1117 = vrot.lane.b32.xlu1 %v1112_v60, %s2143_s14 }
 0x894   : > { %1143 = vperm.xlu1 %1976, %v1140_v61  }
 0x899   : > { %v1106_v41 = vpop.permute.xlu1 %1105 }
 0x89a   : > { %v1111_v32 = vmul.f32 %v1106_v41, %v1080_v34 }
 0x89c   : > { %1115 = vrot.lane.b32.xlu0 %v1111_v32, %s2143_s14 }
 0x8fe   : > { %v1118_v2 = vpop.permute.xlu1 %1117 }
 0x8ff   : > { %v2499_v3 = vadd.f32 %v1118_v2, %v1102_v63 }
 0x901   : > { %2024 = vtanh.f32 %v2499_v3 }
 0x906   : > { %v2518_v52 = vpop.permute.xlu1 %1143 }
 0x907   : > { %v2025_v4 = vpop.eup %2024  ;;  %vm1148_vm6 = vcmp.eq.s32.totalorder %v2518_v52, 1 }
 0x908   : > { %1129 = vrot.lane.b32.xlu0 %v2025_v4, %s2142_s8 }
 0x90e   : > { %v1116_v56 = vpop.permute.xlu0 %1115 }
 0x90f   : > { %v2510_v39 = vadd.f32 %v1116_v56, %v1101_v25 }
 0x911   : > { %2026 = vtanh.f32 %v2510_v39 }
 0x917   : > { %v2027_v6 = vpop.eup %2026 }
 0x918   : > { %1127 = vrot.lane.b32.xlu2 %v2027_v6, %s2142_s8 }
 0x920   : > { %1146 = vperm.xlu2 %1977, %v1141_v53   ;;  %v1876_v53 = vld [vmem:[%s2326_s11 + $0x40] sm:$0xff] }
 0x921   : > { %vm1259_vm15 = vcmp.gt.f32.partialorder %v1876_v53, 0.0 }
 0x922   : > { %v1261_v8 = vsel %vm1259_vm15, 1, %v2141_v26 }
 0x972   : > { %v1128_v58 = vpop.permute.xlu2 %1127 }
 0x973   : > { %v1133_v46 = vmul.f32 %v1128_v58, %v1080_v34 }
 0x975   : > { %v2527_v11 = vsel %vm1148_vm6, %v1133_v46, %v2473_v0 }
 0x97a   : > { %v1130_v9 = vpop.permute.xlu0 %1129  ;;  %v2520_v54 = vpop.permute.xlu2 %1146 }
 0x97b   : > { %v1134_v10 = vmul.f32 %v1130_v9, %v1095_v57  ;;  %vm1149_vm5 = vcmp.eq.s32.totalorder %v2520_v54, 1 }
 0x97c   : > { %v2550_v9 = vsel %vm1149_vm5, %v2499_v3, %v2496_v62 }
 0x97d   : > { %v2532_v12 = vsel %vm1149_vm5, %v1134_v10, %v2478_v1 }
 0x97e   : > { %v1157_v13 = vpack.c.bf16 %v2532_v12, %v2527_v11 }
 0x980   : > { %1159 = vrot.lane.b32.xlu0 %v1157_v13, %s2143_s14 }
 0x9f2   : > { %v1160_v14 = vpop.permute.xlu0 %1159 }
 0x9f3   : > { %1871 = vmatmul.msk.bf16.vlgmr.msra.gmra.mxu2 %vm677_vm13, %v1160_v14 }
 0xa76   : > { %v1173_v18 = vpop.f32.mrf.mxu2 }
 0xa77   : > { %v1178_v19 = vadd.f32 %v1173_v18, %v624_v16  ;;  %v2561_v16 = vsel %vm1148_vm6, %v2510_v39, %v2507_v5 }
 0xa79   : > { %v1872_v0 = vmul.f32 -1.442695, %v1178_v19  ;;  %v1877_v19 = vld [vmem:[%s2326_s11 + $0x48] sm:$0xff] }
 0xa7a   : > { %vm1260_vm1 = vcmp.gt.f32.partialorder %v1877_v19, 0.0 }
 0xa7b   : > { %2028 = vpow2.f32 %v1872_v0  ;;  %v1262_v0 = vsel %vm1260_vm1, 1, %v2141_v26 }
 0xa7e   : > { %v1175_v1 = vpop.f32.mrf.mxu2 }
 0xa7f   : > { %v1179_v23 = vadd.f32 %v1175_v1, %v626_v22 }
 0xa81   : > { %v2029_v24 = vpop.eup %2028  ;;  %v1873_v27 = vmul.f32 -1.442695, %v1179_v23 }
 0xa82   : > { %v1186_v35 = vadd.f32 1.0, %v2029_v24 }
 0xa83   : > { %2030 = vpow2.f32 %v1873_v27 }
 0xa84   : > { %2032 = vrcp.f32 %v1186_v35  ;;  %v1199_v48 = vand.u32 2147483648, %v1186_v35  ;;  %v1197_v50 = vand.u32 2147483647, %v1186_v35  ;;  %vm1193_vm7 = vweird.f32 %v1186_v35 }
 0xa86   : > { %v1200_v29 = vor.u32 1.1754944e-38, %v1199_v48  ;;  %vm1198_vm9 = vcmp.eq.f32.partialorder %v1197_v50, 8.507059e+37 }
 0xa89   : > { %v2031_v36 = vpop.eup %2030 }
 0xa8a   : > { %v2033_v40 = vpop.eup %2032  ;;  %v1187_v34 = vadd.f32 1.0, %v2031_v36  ;;  %v629_v36 = vadd.f32 %v2319_v33, %v2312_v30 }
 0xa8b   : > { %v1189_v21 = vmul.f32 %v2033_v40, %v1186_v35  ;;  %vm1194_vm0 = vweird.f32 %v2033_v40 }
 0xa8c   : > { %2034 = vrcp.f32 %v1187_v34  ;;  %vm1195_vm8 = vmor %vm1193_vm7, %vm1194_vm0  ;;  %v1214_v60 = vand.u32 2147483648, %v1187_v34  ;;  %v1212_v41 = vand.u32 2147483647, %v1187_v34  ;;  %vm1208_vm11 = vweird.f32 %v1187_v34 }
 0xa8d   : > { %v1190_v47 = vsub.f32 1.0, %v1189_v21  ;;  %v631_v21 = vadd.f32 %v2319_v33, %v2314_v31 }
 0xa8e   : > { %v1215_v63 = vor.u32 1.1754944e-38, %v1214_v60  ;;  %vm1213_vm14 = vcmp.eq.f32.partialorder %v1212_v41, 8.507059e+37 }
 0xa8f   : > { %v1191_v49 = vmul.f32 %v2033_v40, %v1190_v47 }
 0xa91   : > { %v1192_v17 = vadd.f32 %v2033_v40, %v1191_v49 }
 0xa92   : > { %v2035_v51 = vpop.eup %2034 }
 0xa93   : > { %v1204_v55 = vmul.f32 %v2035_v51, %v1187_v34  ;;  %v1196_v57 = vsel %vm1195_vm8, %v2033_v40, %v1192_v17  ;;  %vm1209_vm10 = vweird.f32 %v2035_v51 }
 0xa94   : > { %v1201_v28 = vsel %vm1198_vm9, %v1200_v29, %v1196_v57  ;;  %vm1210_vm12 = vmor %vm1208_vm11, %vm1209_vm10 }
 0xa95   : > { %v1205_v37 = vsub.f32 1.0, %v1204_v55  ;;  %v1218_v59 = vmul.f32 2.0, %v1201_v28  ;;  %v1222_v54 = vmul.f32 %v1201_v28, %v2561_v16 }
 0xa97   : > { %v1874_v38 = vadd.f32 -1.0, %v1218_v59  ;;  %v1206_v61 = vmul.f32 %v2035_v51, %v1205_v37 }
 0xa99   : > { %1226 = vrot.lane.b32.xlu1 %v1874_v38, %s2142_s8  ;;  %v1207_v32 = vadd.f32 %v2035_v51, %v1206_v61 }
 0xa9b   : > { %v1211_v2 = vsel %vm1210_vm12, %v2035_v51, %v1207_v32 }
 0xa9c   : > { %v1216_v4 = vsel %vm1213_vm14, %v1215_v63, %v1211_v2 }
 0xa9d   : > { %v1219_v25 = vmul.f32 2.0, %v1216_v4  ;;  %v1223_v10 = vmul.f32 %v1216_v4, %v2550_v9 }
 0xa9f   : > { %v1875_v56 = vadd.f32 -1.0, %v1219_v25 }
 0xaa1   : > { %1228 = vrot.lane.b32.xlu2 %v1875_v56, %s2142_s8 }
 0xafb   : > { %v1229_v6 = vpop.permute.xlu2 %1228 }
 0xafc   : > { %v1233_v7 = vmul.f32 %v1229_v6, %v1216_v4 }
 0xafe   : > { %1238 = vrot.lane.b32.xlu1 %v1233_v7, %s2143_s14 }
 0xb06   : > { %1264 = vperm.xlu1 %1976, %v1261_v8  }
 0xb0b   : > { %v1227_v58 = vpop.permute.xlu1 %1226 }
 0xb0c   : > { %v1232_v46 = vmul.f32 %v1227_v58, %v1201_v28 }
 0xb0e   : > { %1236 = vrot.lane.b32.xlu0 %v1232_v46, %s2143_s14 }
 0xb70   : > { %v1239_v13 = vpop.permute.xlu1 %1238 }
 0xb71   : > { %v2553_v14 = vadd.f32 %v1239_v13, %v1223_v10  ;;  %v1883_v13 = vld [vmem:[%s2326_s11 + $0x50] sm:$0xff] }
 0xb72   : > { %vm1380_vm11 = vcmp.gt.f32.partialorder %v1883_v13, 0.0 }
 0xb73   : > { %2036 = vtanh.f32 %v2553_v14 }
 0xb78   : > { %v2570_v22 = vpop.permute.xlu1 %1264 }
 0xb79   : > { %v2037_v15 = vpop.eup %2036  ;;  %vm1269_vm3 = vcmp.eq.s32.totalorder %v2570_v22, 1 }
 0xb7a   : > { %1250 = vrot.lane.b32.xlu0 %v2037_v15, %s2142_s8  ;;  %v1382_v15 = vsel %vm1380_vm11, 1, %v2141_v26 }
 0xb80   : > { %v1237_v62 = vpop.permute.xlu0 %1236 }
 0xb81   : > { %v2564_v3 = vadd.f32 %v1237_v62, %v1222_v54 }
 0xb83   : > { %2038 = vtanh.f32 %v2564_v3 }
 0xb89   : > { %v2039_v18 = vpop.eup %2038 }
 0xb8a   : > { %1248 = vrot.lane.b32.xlu2 %v2039_v18, %s2142_s8 }
 0xb92   : > { %1267 = vperm.xlu2 %1977, %v1262_v0  }
 0xbe4   : > { %v1249_v20 = vpop.permute.xlu2 %1248 }
 0xbe5   : > { %v1254_v5 = vmul.f32 %v1249_v20, %v1201_v28 }
 0xbe7   : > { %v2579_v23 = vsel %vm1269_vm3, %v1254_v5, %v2527_v11 }
 0xbec   : > { %v1251_v39 = vpop.permute.xlu0 %1250  ;;  %v2572_v52 = vpop.permute.xlu2 %1267 }
 0xbed   : > { %v1255_v1 = vmul.f32 %v1251_v39, %v1216_v4  ;;  %vm1270_vm2 = vcmp.eq.s32.totalorder %v2572_v52, 1  ;;  %v2615_v39 = vsel %vm1269_vm3, %v2564_v3, %v2561_v16 }
 0xbee   : > { %v2604_v18 = vsel %vm1270_vm2, %v2553_v14, %v2550_v9 }
 0xbef   : > { %v2584_v24 = vsel %vm1270_vm2, %v1255_v1, %v2532_v12 }
 0xbf0   : > { %v1278_v27 = vpack.c.bf16 %v2584_v24, %v2579_v23 }
 0xbf2   : > { %1280 = vrot.lane.b32.xlu0 %v1278_v27, %s2143_s14  ;;  %v1884_v27 = vld [vmem:[%s2326_s11 + $0x58] sm:$0xff] }
 0xbf3   : > { %vm1381_vm12 = vcmp.gt.f32.partialorder %v1884_v27, 0.0 }
 0xc64   : > { %v1281_v35 = vpop.permute.xlu0 %1280 }
 0xc65   : > { %1878 = vmatmul.msk.bf16.vlgmr.msrb.gmra.mxu3 %vm677_vm13, %v1281_v35  ;;  %v1383_v35 = vsel %vm1381_vm12, 1, %v2141_v26 }
 0xce8   : > { %v1294_v40 = vpop.f32.mrf.mxu3 }
 0xce9   : > { %v1299_v34 = vadd.f32 %v1294_v40, %v629_v36 }
 0xceb   : > { %v1879_v11 = vmul.f32 -1.442695, %v1299_v34 }
 0xced   : > { %2040 = vpow2.f32 %v1879_v11 }
 0xcf0   : > { %v1296_v12 = vpop.f32.mrf.mxu3 }
 0xcf1   : > { %v1300_v47 = vadd.f32 %v1296_v12, %v631_v21 }
 0xcf3   : > { %v2041_v48 = vpop.eup %2040  ;;  %v1880_v49 = vmul.f32 -1.442695, %v1300_v47 }
 0xcf4   : > { %v1307_v50 = vadd.f32 1.0, %v2041_v48  ;;  %v2647_v48 = vld [vmem:[%s2777_s4] ss:$0 sm:$0xff] }
 0xcf5   : > { %2042 = vpow2.f32 %v1880_v49 }
 0xcf6   : > { %2044 = vrcp.f32 %v1307_v50  ;;  %v1320_v57 = vand.u32 2147483648, %v1307_v50  ;;  %v1318_v37 = vand.u32 2147483647, %v1307_v50  ;;  %vm1314_vm5 = vweird.f32 %v1307_v50 }
 0xcf8   : > { %v1321_v33 = vor.u32 1.1754944e-38, %v1320_v57  ;;  %vm1319_vm0 = vcmp.eq.f32.partialorder %v1318_v37, 8.507059e+37 }
 0xcfb   : > { %v2043_v17 = vpop.eup %2042 }
 0xcfc   : > { %v2045_v51 = vpop.eup %2044  ;;  %v1308_v29 = vadd.f32 1.0, %v2043_v17  ;;  %v636_v17 = vadd.f32 %v2647_v48, %v2372_v43 }
 0xcfd   : > { %v1310_v55 = vmul.f32 %v2045_v51, %v1307_v50  ;;  %vm1315_vm4 = vweird.f32 %v2045_v51 }
 0xcfe   : > { %2046 = vrcp.f32 %v1308_v29  ;;  %vm1316_vm6 = vmor %vm1314_vm5, %vm1315_vm4  ;;  %v1335_v63 = vand.u32 2147483648, %v1308_v29  ;;  %v1333_v25 = vand.u32 2147483647, %v1308_v29  ;;  %vm1329_vm8 = vweird.f32 %v1308_v29 }
 0xcff   : > { %v1311_v30 = vsub.f32 1.0, %v1310_v55 }
 0xd00   : > { %v1336_v6 = vor.u32 1.1754944e-38, %v1335_v63  ;;  %vm1334_vm10 = vcmp.eq.f32.partialorder %v1333_v25, 8.507059e+37 }
 0xd01   : > { %v1312_v28 = vmul.f32 %v2045_v51, %v1311_v30 }
 0xd03   : > { %v1313_v59 = vadd.f32 %v2045_v51, %v1312_v28 }
 0xd04   : > { %v2047_v31 = vpop.eup %2046 }
 0xd05   : > { %v1325_v60 = vmul.f32 %v2047_v31, %v1308_v29  ;;  %v1317_v38 = vsel %vm1316_vm6, %v2045_v51, %v1313_v59  ;;  %vm1330_vm7 = vweird.f32 %v2047_v31 }
 0xd06   : > { %v1322_v61 = vsel %vm1319_vm0, %v1321_v33, %v1317_v38  ;;  %vm1331_vm9 = vmor %vm1329_vm8, %vm1330_vm7 }
 0xd07   : > { %v1326_v41 = vsub.f32 1.0, %v1325_v60  ;;  %v1339_v32 = vmul.f32 2.0, %v1322_v61  ;;  %v1343_v52 = vmul.f32 %v1322_v61, %v2615_v39 }
 0xd09   : > { %v1881_v2 = vadd.f32 -1.0, %v1339_v32  ;;  %v1327_v4 = vmul.f32 %v2047_v31, %v1326_v41 }
 0xd0b   : > { %1347 = vrot.lane.b32.xlu1 %v1881_v2, %s2142_s8  ;;  %v1328_v56 = vadd.f32 %v2047_v31, %v1327_v4 }
 0xd0d   : > { %v1332_v7 = vsel %vm1331_vm9, %v2047_v31, %v1328_v56 }
 0xd0e   : > { %v1337_v53 = vsel %vm1334_vm10, %v1336_v6, %v1332_v7 }
 0xd0f   : > { %v1340_v8 = vmul.f32 2.0, %v1337_v53  ;;  %v1344_v19 = vmul.f32 %v1337_v53, %v2604_v18 }
 0xd11   : > { %v1882_v58 = vadd.f32 -1.0, %v1340_v8 }
 0xd13   : > { %1349 = vrot.lane.b32.xlu2 %v1882_v58, %s2142_s8 }
 0xd6d   : > { %v1350_v46 = vpop.permute.xlu2 %1349 }
 0xd6e   : > { %v1354_v10 = vmul.f32 %v1350_v46, %v1337_v53 }
 0xd70   : > { %1359 = vrot.lane.b32.xlu1 %v1354_v10, %s2143_s14 }
 0xd78   : > { %1385 = vperm.xlu1 %1976, %v1382_v15  }
 0xd7d   : > { %v1348_v54 = vpop.permute.xlu1 %1347 }
 0xd7e   : > { %v1353_v62 = vmul.f32 %v1348_v54, %v1322_v61 }
 0xd80   : > { %1357 = vrot.lane.b32.xlu0 %v1353_v62, %s2143_s14 }
 0xde2   : > { %v1360_v0 = vpop.permute.xlu1 %1359 }
 0xde3   : > { %v2607_v20 = vadd.f32 %v1360_v0, %v1344_v19  ;;  %v1890_v19 = vld [vmem:[%s2326_s11 + $0x60] sm:$0xff] }
 0xde4   : > { %vm1501_vm8 = vcmp.gt.f32.partialorder %v1890_v19, 0.0 }
 0xde5   : > { %2048 = vtanh.f32 %v2607_v20  ;;  %v1503_v0 = vsel %vm1501_vm8, 1, %v2141_v26 }
 0xdea   : > { %v2624_v40 = vpop.permute.xlu1 %1385 }
 0xdeb   : > { %v2049_v5 = vpop.eup %2048  ;;  %vm1390_vm15 = vcmp.eq.s32.totalorder %v2624_v40, 1 }
 0xdec   : > { %1371 = vrot.lane.b32.xlu0 %v2049_v5, %s2142_s8 }
 0xdf2   : > { %v1358_v9 = vpop.permute.xlu0 %1357 }
 0xdf3   : > { %v2618_v14 = vadd.f32 %v1358_v9, %v1343_v52 }
 0xdf5   : > { %2050 = vtanh.f32 %v2618_v14 }
 0xdfb   : > { %v2051_v1 = vpop.eup %2050 }
 0xdfc   : > { %1369 = vrot.lane.b32.xlu2 %v2051_v1, %s2142_s8 }
 0xe04   : > { %1388 = vperm.xlu2 %1977, %v1383_v35  }
 0xe56   : > { %v1370_v36 = vpop.permute.xlu2 %1369 }
 0xe57   : > { %v1375_v16 = vmul.f32 %v1370_v36, %v1322_v61 }
 0xe59   : > { %v2633_v11 = vsel %vm1390_vm15, %v1375_v16, %v2579_v23  ;;  %v634_v23 = vadd.f32 %v2647_v48, %v2370_v42  ;;  %v2674_v16 = vsel %vm1390_vm15, %v2618_v14, %v2615_v39 }
 0xe5e   : > { %v1372_v3 = vpop.permute.xlu0 %1371  ;;  %v2626_v22 = vpop.permute.xlu2 %1388 }
 0xe5f   : > { %v1376_v34 = vmul.f32 %v1372_v3, %v1337_v53  ;;  %vm1391_vm14 = vcmp.eq.s32.totalorder %v2626_v22, 1 }
 0xe60   : > { %v2663_v9 = vsel %vm1391_vm14, %v2607_v20, %v2604_v18 }
 0xe61   : > { %v2638_v21 = vsel %vm1391_vm14, %v1376_v34, %v2584_v24  ;;  %v1891_v34 = vld [vmem:[%s2326_s11 + $0x68] sm:$0xff] }
 0xe62   : > { %v1399_v12 = vpack.c.bf16 %v2638_v21, %v2633_v11  ;;  %vm1502_vm9 = vcmp.gt.f32.partialorder %v1891_v34, 0.0 }
 0xe64   : > { %1401 = vrot.lane.b32.xlu0 %v1399_v12, %s2143_s14  ;;  %v1504_v12 = vsel %vm1502_vm9, 1, %v2141_v26 }
 0xed6   : > { %v1402_v47 = vpop.permute.xlu0 %1401 }
 0xed7   : > { %1885 = vmatmul.msk.bf16.vlgmr.msrb.gmra.mxu1 %vm677_vm13, %v1402_v47 }
 0xf54   : > { %v1415_v49 = vpop.f32.mrf.mxu1 }
 0xf55   : > { %v1420_v50 = vadd.f32 %v1415_v49, %v634_v23 }
 0xf57   : > { %v1886_v24 = vmul.f32 -1.442695, %v1420_v50 }
 0xf59   : > { %2052 = vpow2.f32 %v1886_v24 }
 0xf5c   : > { %v1417_v51 = vpop.f32.mrf.mxu1 }
 0xf5d   : > { %v1421_v29 = vadd.f32 %v1417_v51, %v636_v17 }
 0xf5f   : > { %v2053_v55 = vpop.eup %2052  ;;  %v1887_v30 = vmul.f32 -1.442695, %v1421_v29  ;;  %v639_v29 = vadd.f32 %v2647_v48, %v2374_v44 }
 0xf60   : > { %v1428_v57 = vadd.f32 1.0, %v2053_v55 }
 0xf61   : > { %2054 = vpow2.f32 %v1887_v30 }
 0xf62   : > { %2056 = vrcp.f32 %v1428_v57  ;;  %v1441_v33 = vand.u32 2147483648, %v1428_v57  ;;  %v1439_v38 = vand.u32 2147483647, %v1428_v57  ;;  %vm1435_vm2 = vweird.f32 %v1428_v57 }
 0xf64   : > { %v1442_v41 = vor.u32 1.1754944e-38, %v1441_v33  ;;  %vm1440_vm4 = vcmp.eq.f32.partialorder %v1439_v38, 8.507059e+37 }
 0xf67   : > { %v2055_v28 = vpop.eup %2054 }
 0xf68   : > { %v2057_v37 = vpop.eup %2056  ;;  %v1429_v59 = vadd.f32 1.0, %v2055_v28 }
 0xf69   : > { %v1431_v31 = vmul.f32 %v2057_v37, %v1428_v57  ;;  %vm1436_vm1 = vweird.f32 %v2057_v37  ;;  %v641_v57 = vadd.f32 %v2647_v48, %v2376_v45 }
 0xf6a   : > { %2058 = vrcp.f32 %v1429_v59  ;;  %vm1437_vm3 = vmor %vm1435_vm2, %vm1436_vm1  ;;  %v1456_v56 = vand.u32 2147483648, %v1429_v59  ;;  %v1454_v53 = vand.u32 2147483647, %v1429_v59  ;;  %vm1450_vm6 = vweird.f32 %v1429_v59 }
 0xf6b   : > { %v1432_v42 = vsub.f32 1.0, %v1431_v31 }
 0xf6c   : > { %v1457_v58 = vor.u32 1.1754944e-38, %v1456_v56  ;;  %vm1455_vm7 = vcmp.eq.f32.partialorder %v1454_v53, 8.507059e+37 }
 0xf6d   : > { %v1433_v60 = vmul.f32 %v2057_v37, %v1432_v42 }
 0xf6f   : > { %v1434_v61 = vadd.f32 %v2057_v37, %v1433_v60 }
 0xf70   : > { %v2059_v43 = vpop.eup %2058 }
 0xf71   : > { %v1446_v32 = vmul.f32 %v2059_v43, %v1429_v59  ;;  %v1438_v63 = vsel %vm1437_vm3, %v2057_v37, %v1434_v61  ;;  %vm1451_vm5 = vweird.f32 %v2059_v43 }
 0xf72   : > { %v1443_v2 = vsel %vm1440_vm4, %v1442_v41, %v1438_v63  ;;  %vm1452_vm0 = vmor %vm1450_vm6, %vm1451_vm5 }
 0xf73   : > { %v1447_v4 = vsub.f32 1.0, %v1446_v32  ;;  %v1460_v25 = vmul.f32 2.0, %v1443_v2  ;;  %v1464_v3 = vmul.f32 %v1443_v2, %v2674_v16 }
 0xf75   : > { %v1888_v6 = vadd.f32 -1.0, %v1460_v25  ;;  %v1448_v7 = vmul.f32 %v2059_v43, %v1447_v4 }
 0xf77   : > { %1468 = vrot.lane.b32.xlu1 %v1888_v6, %s2142_s8  ;;  %v1449_v8 = vadd.f32 %v2059_v43, %v1448_v7 }
 0xf79   : > { %v1453_v46 = vsel %vm1452_vm0, %v2059_v43, %v1449_v8 }
 0xf7a   : > { %v1458_v10 = vsel %vm1455_vm7, %v1457_v58, %v1453_v46 }
 0xf7b   : > { %v1461_v13 = vmul.f32 2.0, %v1458_v10  ;;  %v1465_v1 = vmul.f32 %v1458_v10, %v2663_v9 }
 0xf7d   : > { %v1889_v15 = vadd.f32 -1.0, %v1461_v13 }
 0xf7f   : > { %1470 = vrot.lane.b32.xlu2 %v1889_v15, %s2142_s8 }
 0xfd9   : > { %v1471_v54 = vpop.permute.xlu2 %1470 }
 0xfda   : > { %v1475_v62 = vmul.f32 %v1471_v54, %v1458_v10 }
 0xfdc   : > { %1480 = vrot.lane.b32.xlu1 %v1475_v62, %s2143_s14 }
 0xfe4   : > { %1506 = vperm.xlu1 %1976, %v1503_v0   ;;  %v1897_v0 = vld [vmem:[%s2326_s11 + $0x70] sm:$0xff] }
 0xfe5   : > { %vm1622_vm6 = vcmp.gt.f32.partialorder %v1897_v0, 0.0 }
 0xfe9   : > { %v1469_v5 = vpop.permute.xlu1 %1468 }
 0xfea   : > { %v1474_v52 = vmul.f32 %v1469_v5, %v1443_v2  ;;  %v1624_v5 = vsel %vm1622_vm6, 1, %v2141_v26 }
 0xfec   : > { %1478 = vrot.lane.b32.xlu0 %v1474_v52, %s2143_s14 }
0x104e   : > { %v1481_v27 = vpop.permute.xlu1 %1480 }
0x104f   : > { %v2666_v35 = vadd.f32 %v1481_v27, %v1465_v1 }
0x1051   : > { %2060 = vtanh.f32 %v2666_v35 }
0x1056   : > { %v2683_v23 = vpop.permute.xlu1 %1506 }
0x1057   : > { %v2061_v36 = vpop.eup %2060  ;;  %vm1511_vm11 = vcmp.eq.s32.totalorder %v2683_v23, 1 }
0x1058   : > { %1492 = vrot.lane.b32.xlu0 %v2061_v36, %s2142_s8 }
0x105e   : > { %v1479_v18 = vpop.permute.xlu0 %1478 }
0x105f   : > { %v2677_v20 = vadd.f32 %v1479_v18, %v1464_v3 }
0x1061   : > { %2062 = vtanh.f32 %v2677_v20  ;;  %v1515_v34 = vsel %vm1511_vm11, %v2677_v20, %v2674_v16  ;;  %v1926_v16 = vld [vmem:[%s2778_s5] sm:$0xff] }
0x1067   : > { %v2063_v22 = vpop.eup %2062 }
0x1068   : > { %1490 = vrot.lane.b32.xlu2 %v2063_v22, %s2142_s8 }
0x1070   : > { %1509 = vperm.xlu2 %1977, %v1504_v12  }
0x10c2   : > { %v1491_v47 = vpop.permute.xlu2 %1490 }
0x10c3   : > { %v1496_v39 = vmul.f32 %v1491_v47, %v1443_v2 }
0x10c5   : > { %v2692_v50 = vsel %vm1511_vm11, %v1496_v39, %v2633_v11 }
0x10ca   : > { %v1493_v14 = vpop.permute.xlu0 %1492  ;;  %v2685_v40 = vpop.permute.xlu2 %1509 }
0x10cb   : > { %v1497_v49 = vmul.f32 %v1493_v14, %v1458_v10  ;;  %vm1512_vm10 = vcmp.eq.s32.totalorder %v2685_v40, 1 }
0x10cc   : > { %v1516_v27 = vsel %vm1512_vm10, %v2666_v35, %v2663_v9  ;;  %v1927_v35 = vld [vmem:[%s2778_s5 + $0x8] sm:$0xff] }
0x10cd   : > { %v2697_v24 = vsel %vm1512_vm10, %v1497_v49, %v2638_v21  ;;  %v1898_v49 = vld [vmem:[%s2326_s11 + $0x78] sm:$0xff]  ;;  %1669 = vmatpush.bf16.msra.mxu3 %v1927_v35 }
0x10ce   : > { %v1520_v17 = vpack.c.bf16 %v2697_v24, %v2692_v50  ;;  %vm1623_vm0 = vcmp.gt.f32.partialorder %v1898_v49, 0.0 }
0x10cf   : > { %v1625_v9 = vsel %vm1623_vm0, 1, %v2141_v26 }
0x10d0   : > { %1522 = vrot.lane.b32.xlu0 %v1520_v17, %s2143_s14 }
0x10d1   : > { %1670 = vmatpush.bf16.msra.mxu3 %v1926_v16 }
0x1142   : > { %v1523_v51 = vpop.permute.xlu0 %1522 }
0x1143   : > { %1892 = vmatmul.msk.bf16.vlgmr.msrb.gmra.mxu2 %vm677_vm13, %v1523_v51 }
0x11c6   : > { %v1536_v55 = vpop.f32.mrf.mxu2 }
0x11c7   : > { %v1541_v30 = vadd.f32 %v1536_v55, %v639_v29 }
0x11c9   : > { %v1893_v11 = vmul.f32 -1.442695, %v1541_v30 }
0x11cb   : > { %2064 = vpow2.f32 %v1893_v11 }
0x11ce   : > { %v1538_v21 = vpop.f32.mrf.mxu2 }
0x11cf   : > { %v1542_v28 = vadd.f32 %v1538_v21, %v641_v57  ;;  %v1979_v57 = vld [vmem:[%s2779_s6] ss:$0 sm:$0xff] }
0x11d1   : > { %v2065_v37 = vpop.eup %2064  ;;  %v1894_v59 = vmul.f32 -1.442695, %v1542_v28 }
0x11d2   : > { %v1549_v31 = vadd.f32 1.0, %v2065_v37 }
0x11d3   : > { %2066 = vpow2.f32 %v1894_v59 }
0x11d4   : > { %2068 = vrcp.f32 %v1549_v31  ;;  %v1562_v61 = vand.u32 2147483648, %v1549_v31  ;;  %v1560_v41 = vand.u32 2147483647, %v1549_v31  ;;  %vm1556_vm14 = vweird.f32 %v1549_v31 }
0x11d6   : > { %v1563_v48 = vor.u32 1.1754944e-38, %v1562_v61  ;;  %vm1561_vm1 = vcmp.eq.f32.partialorder %v1560_v41, 8.507059e+37 }
0x11d9   : > { %v2067_v42 = vpop.eup %2066 }
0x11da   : > { %v2069_v33 = vpop.eup %2068  ;;  %v1550_v60 = vadd.f32 1.0, %v2067_v42 }
0x11db   : > { %v1552_v38 = vmul.f32 %v2069_v33, %v1549_v31  ;;  %vm1557_vm12 = vweird.f32 %v2069_v33 }
0x11dc   : > { %2070 = vrcp.f32 %v1550_v60  ;;  %vm1558_vm15 = vmor %vm1556_vm14, %vm1557_vm12  ;;  %v1577_v6 = vand.u32 2147483648, %v1550_v60  ;;  %v1575_v8 = vand.u32 2147483647, %v1550_v60  ;;  %vm1571_vm3 = vweird.f32 %v1550_v60 }
0x11dd   : > { %v1553_v44 = vsub.f32 1.0, %v1552_v38 }
0x11de   : > { %v1578_v46 = vor.u32 1.1754944e-38, %v1577_v6  ;;  %vm1576_vm5 = vcmp.eq.f32.partialorder %v1575_v8, 8.507059e+37 }
0x11df   : > { %v1554_v43 = vmul.f32 %v2069_v33, %v1553_v44 }
0x11e1   : > { %v1555_v32 = vadd.f32 %v2069_v33, %v1554_v43 }
0x11e2   : > { %v2071_v45 = vpop.eup %2070 }
0x11e3   : > { %v1567_v63 = vmul.f32 %v2071_v45, %v1550_v60  ;;  %v1559_v2 = vsel %vm1558_vm15, %v2069_v33, %v1555_v32  ;;  %vm1572_vm2 = vweird.f32 %v2071_v45 }
0x11e4   : > { %v1564_v4 = vsel %vm1561_vm1, %v1563_v48, %v1559_v2  ;;  %vm1573_vm4 = vmor %vm1571_vm3, %vm1572_vm2 }
0x11e5   : > { %v1568_v25 = vsub.f32 1.0, %v1567_v63  ;;  %v1581_v56 = vmul.f32 2.0, %v1564_v4  ;;  %v1585_v12 = vmul.f32 %v1564_v4, %v1515_v34 }
0x11e7   : > { %v1895_v7 = vadd.f32 -1.0, %v1581_v56  ;;  %v1569_v53 = vmul.f32 %v2071_v45, %v1568_v25 }
0x11e9   : > { %1589 = vrot.lane.b32.xlu1 %v1895_v7, %s2142_s8  ;;  %v1570_v58 = vadd.f32 %v2071_v45, %v1569_v53 }
0x11eb   : > { %v1574_v10 = vsel %vm1573_vm4, %v2071_v45, %v1570_v58 }
0x11ec   : > { %v1579_v13 = vsel %vm1576_vm5, %v1578_v46, %v1574_v10 }
0x11ed   : > { %v1582_v15 = vmul.f32 2.0, %v1579_v13  ;;  %v1586_v36 = vmul.f32 %v1579_v13, %v1516_v27 }
0x11ef   : > { %v1896_v54 = vadd.f32 -1.0, %v1582_v15 }
0x11f1   : > { %1591 = vrot.lane.b32.xlu2 %v1896_v54, %s2142_s8 }
0x124b   : > { %v1592_v62 = vpop.permute.xlu2 %1591 }
0x124c   : > { %v1596_v19 = vmul.f32 %v1592_v62, %v1579_v13 }
0x124e   : > { %1601 = vrot.lane.b32.xlu1 %v1596_v19, %s2143_s14 }
0x1256   : > { %1627 = vperm.xlu1 %1976, %v1624_v5  }
0x125b   : > { %v1590_v52 = vpop.permute.xlu1 %1589 }
0x125c   : > { %v1595_v1 = vmul.f32 %v1590_v52, %v1564_v4 }
0x125e   : > { %1599 = vrot.lane.b32.xlu0 %v1595_v1, %s2143_s14 }
0x12c0   : > { %v1602_v3 = vpop.permute.xlu1 %1601 }
0x12c1   : > { %v1606_v18 = vadd.f32 %v1602_v3, %v1586_v36 }
0x12c3   : > { %2072 = vtanh.f32 %v1606_v18 }
0x12c8   : > { %v1628_v23 = vpop.permute.xlu1 %1627 }
0x12c9   : > { %v2073_v22 = vpop.eup %2072  ;;  %vm1632_vm8 = vcmp.eq.s32.totalorder %v1628_v23, 1 }
0x12ca   : > { %1613 = vrot.lane.b32.xlu0 %v2073_v22, %s2142_s8 }
0x12d0   : > { %v1600_v47 = vpop.permute.xlu0 %1599 }
0x12d1   : > { %v1605_v39 = vadd.f32 %v1600_v47, %v1585_v12 }
0x12d3   : > { %2074 = vtanh.f32 %v1605_v39 }
0x12d9   : > { %v2075_v14 = vpop.eup %2074 }
0x12da   : > { %1611 = vrot.lane.b32.xlu2 %v2075_v14, %s2142_s8  ;;  %s1928_s8 = sshll.u32 %s1780_s28, 4 }
0x12db   : > { %s1691_s15 = scalar_lea.hbm %s2780_s7, %s1928_s8 }
0x12dc   : > { %s1694_s18 = sshll.u32 %s1691_s15, 4  ;;  %s1695_s18 = int_to_ptr.hbm [resolvable:$true] %s1694_s18 }
0x12dd   : > { %s2091_s20 = sshra.s32 %s1695_s18, 4  ;;  %s2092_s20 = int_to_ptr.hbm [resolvable:$true] %s2091_s20 }
0x12de   : > { %s2093_s28 = scalar_lea.hbm %s2092_s20, 16  ;;  %p2098_p2 = scmp.lt.s32.totalorder %s2092_s20, %s2780_s7 }
0x12df   : > { %p2094_p13 = scmp.ne.s32.totalorder %s2092_s20, %s2093_s28  ;;  %p2099_p3 = scmp.lt.s32.totalorder %s2097_s22, %s2093_s28 }
0x12e1   : > { %p2095_p0 = pnand %p2094_p13, %p2228_p6  ;;  %p2100_p4 = por %p2099_p3, %p2098_p2 }
0x12e2   : > { %1630 = vperm.xlu2 %1977, %v1625_v9  }
0x12e3   : > { %p2096_p1 = pneg %p2095_p0 }
0x12e5   : > { %p2101_p5 = pnand %p2100_p4, %p2096_p1 }
0x1334   : > { %v1612_v20 = vpop.permute.xlu2 %1611 }
0x1335   : > { %v1617_v40 = vmul.f32 %v1612_v20, %v1564_v4 }
0x1337   : > { %v1634_v26 = vsel %vm1632_vm8, %v1617_v40, %v2692_v50 }
0x133c   : > { %v1614_v17 = vpop.permute.xlu0 %1613  ;;  %v1631_v51 = vpop.permute.xlu2 %1630 }
0x133d   : > { %v1618_v29 = vmul.f32 %v1614_v17, %v1579_v13  ;;  %vm1633_vm7 = vcmp.eq.s32.totalorder %v1631_v51, 1 }
0x133f   : > { %v1635_v55 = vsel %vm1633_vm7, %v1618_v29, %v2697_v24 }
0x1340   : > { %v1636_v30 = vpack.c.bf16 %v1635_v55, %v1634_v26 }
0x1342   : > { %1646 = vrot.lane.b32.xlu0 %v1636_v30, %s2143_s14  ;;  %s1692_s14 = sshll.u32 %s496_s17, 4  ;;  %s1693_s14 = int_to_ptr.vmem [resolvable:$true] %s1692_s14 }
0x13b4   : > { %v1647_v11 = vpop.permute.xlu0 %1646 }
0x13b5   : > { %1907 = vmatmul.msk.bf16.vlgmr.msra.gmra.mxu3 %vm677_vm13, %v1647_v11 }
0x1438   : > { %v1672_v21 = vpop.f32.mrf.mxu3 }
0x1439   : > { %v1673_v28 = vadd.f32 %v1979_v57, %v1672_v21 }
0x143b   : > { %1677 = vst [vmem:[%s496_s17] sm:$0xff] %v1673_v28 }
0x1440   : > { %v1674_v50 = vpop.f32.mrf.mxu3 }
0x1441   : > { %v1675_v24 = vadd.f32 %v1979_v57, %v1674_v50 }
0x1443   : > { %1678 = vst [vmem:[%s496_s17 + $0x8] sm:$0xff] %v1675_v24 }
0x1444   : > { %2104 = shalt.err (!%p2101_p5)
}
0x1445   : > { %s2144_s16 = smov 128   ;;  %s2145_s9 = smov 8  }
0x1446   : > { %1931 = dma.vmem_to_hbm [thread:$0]  (%p2228_p6), %s1693_s14, 256, %s1695_s18, %s1680_s19, %s2144_s16, %s2144_s16, %s2145_s9  }
0x1447 PF: > { %s1709_s11 = sand.u32 1, %s2127_s24   ;;  %p1934_p7 = pnand %p1783_p9, %p2232_p8 }
0x1448   : > { %s1710_s15 = scalar_lea.sflag [#allocation6], %s1709_s11 }
0x1449   : > { %p1935_p10 = pneg %p1934_p7 }
0x144b   : > { %2122 = dma.done.wait (%p1935_p10), %s1710_s15, 256  }
0x144c   : > { %2124 = vsyncadd (%p1935_p10), %s1710_s15, 4294967040  ;;  %p17_p11 = scmp.ge.s32.totalorder %s2209_s30, 4   ;;  %s2784_s24 = smov %s2131_s25 }
0x144d   : > { %s2785_s25 = smov %s2135_s26  ;;  %s2786_s26 = smov %s2222_s10 }
0x144e   : > { %s2787_s27 = smov %s2209_s30  ;;  %19 = sbr.rel (!%p17_p11) target bundleno = 3 (0x3), region = 189 }
0x1453   :  { %1716 = vsyncpa [#allocation6], 1 }
0x1454   :  { %1718 = vsyncpa [#allocation6 + $0x1], 1 }

</bundles_post_ra>
